<compile_context>
chip_gen: v5e
topology: v5e:2x2
jax: 0.10.0
libtpu: 0.0.40
codegen_flags: <defaults>
</compile_context>

<pallas_src>
import functools

import jax
import jax.numpy as jnp
from jax.experimental import pallas as pl
from jax.experimental.pallas import tpu as pltpu


def _stacked_lstm_kernel(num_layers, hidden, batch, *refs):
    """Fused L-layer LSTM over the whole sequence.

    refs layout:
      refs[0]                      : x_flat   (T*B, D_in)   time-major, flattened
      refs[1 + 3l + 0]             : W_ih^T   (D_l, 4H)     gate order [i,f,o,g]
      refs[1 + 3l + 1]             : W_hh^T   (H,   4H)     gate order [i,f,o,g]
      refs[1 + 3l + 2]             : bias     (1,   4H)     b_ih + b_hh, permuted
      refs[1 + 3L + 0]             : hx out   (L, B, H)
      refs[1 + 3L + 1]             : cx out   (L, B, H)
      refs[1 + 3L + 2]             : seq VMEM scratch (T*B, H)
    """
    H = hidden
    B = batch
    x_ref = refs[0]
    w_refs = refs[1:1 + 3 * num_layers]
    hx_ref = refs[1 + 3 * num_layers]
    cx_ref = refs[2 + 3 * num_layers]
    seq_ref = refs[3 + 3 * num_layers]

    TB = x_ref.shape[0]
    T = TB // B

    for l in range(num_layers):
        wih = w_refs[3 * l + 0][...]          # (D_l, 4H)
        whh = w_refs[3 * l + 1][...]          # (H,  4H)
        bias = w_refs[3 * l + 2][...]         # (1,  4H)

        xs = x_ref[...] if l == 0 else seq_ref[...]      # (T*B, D_l)

        # Hoisted input projection: one MXU matmul for all T timesteps.
        gx = jnp.dot(xs, wih, preferred_element_type=jnp.float32) + bias  # (T*B, 4H)

        h = jnp.zeros((B, H), jnp.float32)
        c = jnp.zeros((B, H), jnp.float32)

        # Serial recurrence, fully unrolled (T is small & static): only the
        # h-dependent matmul sits on the critical path.
        for t in range(T):
            gates = gx[t * B:(t + 1) * B, :] + jnp.dot(
                h, whh, preferred_element_type=jnp.float32)          # (B, 4H)

            # gate layout is [i, f, o, g]: sigmoid on the dense 3H lane group,
            # tanh on the remaining H lanes.
            sig = jax.nn.sigmoid(gates[:, 0:3 * H])
            g_gate = jnp.tanh(gates[:, 3 * H:4 * H])
            i_gate = sig[:, 0 * H:1 * H]
            f_gate = sig[:, 1 * H:2 * H]
            o_gate = sig[:, 2 * H:3 * H]

            c = f_gate * c + i_gate * g_gate
            h = o_gate * jnp.tanh(c)

            if l + 1 < num_layers:
                seq_ref[pl.ds(t * B, B), :] = h   # feed next layer (stays in VMEM)

        hx_ref[l] = h
        cx_ref[l] = c


def _permute_gates(w):
    """Reorder the 4H gate axis (axis 0) from PyTorch [i,f,g,o] to [i,f,o,g]."""
    i, f, g, o = jnp.split(w, 4, axis=0)
    return jnp.concatenate([i, f, o, g], axis=0)


@jax.jit
def rnn_forward(x, params):
    """Equivalent of RNN.forward with rnn_mode='lstm' and zero initial states.

    x: (B, T, input_size), batch_first like PyTorch.
    params: list of (w_ih (4H,D), w_hh (4H,H), b_ih (4H,), b_hh (4H,)) per layer.
    Returns (xh, (hx, cx)) with xh: (B, H), hx/cx: (L, B, H).
    """
    B, T, D_in = x.shape
    L = len(params)
    H = params[0][1].shape[1]

    # Time-major + flattened: (T*B, D_in); done once in XLA outside the kernel.
    x_flat = jnp.transpose(x, (1, 0, 2)).reshape(T * B, D_in).astype(jnp.float32)

    flat_weights = []
    for (w_ih, w_hh, b_ih, b_hh) in params:
        flat_weights.append(jnp.asarray(_permute_gates(w_ih).T, jnp.float32))   # (D_l, 4H)
        flat_weights.append(jnp.asarray(_permute_gates(w_hh).T, jnp.float32))   # (H, 4H)
        flat_weights.append(
            _permute_gates(b_ih + b_hh).reshape(1, 4 * H).astype(jnp.float32))  # (1, 4H)

    kernel = functools.partial(_stacked_lstm_kernel, L, H, B)

    hx, cx = pl.pallas_call(
        kernel,
        out_shape=(
            jax.ShapeDtypeStruct((L, B, H), jnp.float32),
            jax.ShapeDtypeStruct((L, B, H), jnp.float32),
        ),
        scratch_shapes=[pltpu.VMEM((T * B, H), jnp.float32)],
    )(x_flat, *flat_weights)

    xh = hx[L - 1]
    return xh, (hx, cx)


def _ref_lstm(x, params, num_layers):
    """Pure-JAX reference of a stacked LSTM (eval mode, zero init, PyTorch gate order)."""
    B, T, _ = x.shape
    cur = x.astype(jnp.float32)
    hs, cs = [], []
    for l in range(num_layers):
        w_ih, w_hh, b_ih, b_hh = params[l]
        H = w_hh.shape[1]
        h = jnp.zeros((B, H), jnp.float32)
        c = jnp.zeros((B, H), jnp.float32)
        outs = []
        for t in range(T):
            gates = cur[:, t, :] @ w_ih.T + h @ w_hh.T + b_ih + b_hh
            i = jax.nn.sigmoid(gates[:, 0 * H:1 * H])
            f = jax.nn.sigmoid(gates[:, 1 * H:2 * H])
            g = jnp.tanh(gates[:, 2 * H:3 * H])
            o = jax.nn.sigmoid(gates[:, 3 * H:4 * H])
            c = f * c + i * g
            h = o * jnp.tanh(c)
            outs.append(h)
        cur = jnp.stack(outs, axis=1)
        hs.append(h)
        cs.append(c)
    return jnp.stack(hs), jnp.stack(cs)


def make_params(key, num_layers, input_size, hidden):
    """Deterministic PyTorch-style init: U(-1/sqrt(H), 1/sqrt(H))."""
    params = []
    k = 1.0 / jnp.sqrt(hidden)
    for l in range(num_layers):
        d_in = input_size if l == 0 else hidden
        key, k1, k2, k3, k4 = jax.random.split(key, 5)
        w_ih = jax.random.uniform(k1, (4 * hidden, d_in), jnp.float32, -k, k)
        w_hh = jax.random.uniform(k2, (4 * hidden, hidden), jnp.float32, -k, k)
        b_ih = jax.random.uniform(k3, (4 * hidden,), jnp.float32, -k, k)
        b_hh = jax.random.uniform(k4, (4 * hidden,), jnp.float32, -k, k)
        params.append((w_ih, w_hh, b_ih, b_hh))
    return params


if __name__ == "__main__":
    # args: input_size=16, seq_len=8, num_rnn_layer=2, hidden_rnn=32, rnn_mode='lstm'
    B, T, D_IN, H, L = 2, 8, 16, 32, 2

    key = jax.random.PRNGKey(0)
    key, kx, kp = jax.random.split(key, 3)
    x = jax.random.normal(kx, (B, T, D_IN), jnp.float32)
    params = make_params(kp, L, D_IN, H)

    xh, (hx, cx) = rnn_forward(x, params)
    jax.block_until_ready((xh, hx, cx))

    # sanity check against pure-JAX reference (unfused, unpermuted gate order)
    hx_ref, cx_ref = _ref_lstm(x, params, L)
    assert jnp.allclose(hx, hx_ref, atol=1e-5), "hx mismatch"
    assert jnp.allclose(cx, cx_ref, atol=1e-5), "cx mismatch"
    assert jnp.allclose(xh, hx_ref[L - 1], atol=1e-5), "xh mismatch"
    assert xh.shape == (B, H) and hx.shape == (L, B, H) and cx.shape == (L, B, H)

    print("KERNEL_OK")
</pallas_src>

<mosaic_0001>
module attributes {stable_mosaic.version = 11 : i64} {
  func.func @_stacked_lstm_kernel(%arg0: memref<16x16xf32, #tpu.memory_space<vmem>>, %arg1: memref<16x128xf32, #tpu.memory_space<vmem>>, %arg2: memref<32x128xf32, #tpu.memory_space<vmem>>, %arg3: memref<1x128xf32, #tpu.memory_space<vmem>>, %arg4: memref<32x128xf32, #tpu.memory_space<vmem>>, %arg5: memref<32x128xf32, #tpu.memory_space<vmem>>, %arg6: memref<1x128xf32, #tpu.memory_space<vmem>>, %arg7: memref<2x2x32xf32, #tpu.memory_space<vmem>>, %arg8: memref<2x2x32xf32, #tpu.memory_space<vmem>>, %arg9: memref<16x32xf32, #tpu.memory_space<vmem>>) attributes {dimension_semantics = [], scalar_prefetch = 0 : i64, scratch_operands = 1 : i64, tpu.core_type = #tpu.core_type<tc>} {
    %c0 = arith.constant 0 : index
    %c0_0 = arith.constant 0 : index
    %0 = vector.load %arg1[%c0, %c0_0] : memref<16x128xf32, #tpu.memory_space<vmem>>, vector<16x128xf32>
    %c0_1 = arith.constant 0 : index
    %c0_2 = arith.constant 0 : index
    %1 = vector.load %arg2[%c0_1, %c0_2] : memref<32x128xf32, #tpu.memory_space<vmem>>, vector<32x128xf32>
    %c0_3 = arith.constant 0 : index
    %c0_4 = arith.constant 0 : index
    %2 = vector.load %arg3[%c0_3, %c0_4] : memref<1x128xf32, #tpu.memory_space<vmem>>, vector<1x128xf32>
    %c0_5 = arith.constant 0 : index
    %c0_6 = arith.constant 0 : index
    %3 = vector.load %arg0[%c0_5, %c0_6] : memref<16x16xf32, #tpu.memory_space<vmem>>, vector<16x16xf32>
    %cst = arith.constant dense<0.000000e+00> : vector<16x128xf32>
    %4 = tpu.matmul %3, %0, %cst {dimension_numbers = #tpu.dot_dimension_numbers<[1], [0], [0], [1], [0, 0, 1, 1], [], []>} : vector<16x16xf32>, vector<16x128xf32>, vector<16x128xf32> -> vector<16x128xf32>
    %5 = vector.broadcast %2 : vector<1x128xf32> to vector<16x128xf32>
    %6 = arith.addf %4, %5 : vector<16x128xf32>
    %cst_7 = arith.constant 0.000000e+00 : f32
    %7 = vector.broadcast %cst_7 : f32 to vector<2x32xf32>
    %cst_8 = arith.constant 0.000000e+00 : f32
    %8 = vector.broadcast %cst_8 : f32 to vector<2x32xf32>
    %9 = vector.extract_strided_slice %6 {offsets = [0, 0], sizes = [2, 128], strides = [1, 1]} : vector<16x128xf32> to vector<2x128xf32>
    %cst_9 = arith.constant dense<0.000000e+00> : vector<2x128xf32>
    %10 = tpu.matmul %7, %1, %cst_9 {dimension_numbers = #tpu.dot_dimension_numbers<[1], [0], [0], [1], [0, 0, 1, 1], [], []>} : vector<2x32xf32>, vector<32x128xf32>, vector<2x128xf32> -> vector<2x128xf32>
    %11 = arith.addf %9, %10 : vector<2x128xf32>
    %12 = vector.extract_strided_slice %11 {offsets = [0, 0], sizes = [2, 96], strides = [1, 1]} : vector<2x128xf32> to vector<2x96xf32>
    %13 = arith.negf %12 : vector<2x96xf32>
    %14 = math.exp %13 : vector<2x96xf32>
    %cst_10 = arith.constant 1.000000e+00 : f32
    %15 = vector.broadcast %cst_10 : f32 to vector<2x96xf32>
    %16 = arith.addf %15, %14 : vector<2x96xf32>
    %17 = arith.divf %15, %16 : vector<2x96xf32>
    %18 = vector.extract_strided_slice %11 {offsets = [0, 96], sizes = [2, 32], strides = [1, 1]} : vector<2x128xf32> to vector<2x32xf32>
    %19 = math.tanh %18 : vector<2x32xf32>
    %20 = vector.extract_strided_slice %17 {offsets = [0, 0], sizes = [2, 32], strides = [1, 1]} : vector<2x96xf32> to vector<2x32xf32>
    %21 = vector.extract_strided_slice %17 {offsets = [0, 32], sizes = [2, 32], strides = [1, 1]} : vector<2x96xf32> to vector<2x32xf32>
    %22 = vector.extract_strided_slice %17 {offsets = [0, 64], sizes = [2, 32], strides = [1, 1]} : vector<2x96xf32> to vector<2x32xf32>
    %23 = arith.mulf %21, %8 : vector<2x32xf32>
    %24 = arith.mulf %20, %19 : vector<2x32xf32>
    %25 = arith.addf %23, %24 : vector<2x32xf32>
    %26 = math.tanh %25 : vector<2x32xf32>
    %27 = arith.mulf %22, %26 : vector<2x32xf32>
    %c0_11 = arith.constant 0 : index
    %c0_12 = arith.constant 0 : index
    %28 = vector.load %arg9[%c0_11, %c0_12] : memref<16x32xf32, #tpu.memory_space<vmem>>, vector<2x32xf32>
    tpu.vector_store %arg9[%c0_11, %c0_12], %27 {strides = array<i32>} : memref<16x32xf32, #tpu.memory_space<vmem>>, vector<2x32xf32>,
    %29 = vector.extract_strided_slice %6 {offsets = [2, 0], sizes = [2, 128], strides = [1, 1]} : vector<16x128xf32> to vector<2x128xf32>
    %cst_13 = arith.constant dense<0.000000e+00> : vector<2x128xf32>
    %30 = tpu.matmul %27, %1, %cst_13 {dimension_numbers = #tpu.dot_dimension_numbers<[1], [0], [0], [1], [0, 0, 1, 1], [], []>} : vector<2x32xf32>, vector<32x128xf32>, vector<2x128xf32> -> vector<2x128xf32>
    %31 = arith.addf %29, %30 : vector<2x128xf32>
    %32 = vector.extract_strided_slice %31 {offsets = [0, 0], sizes = [2, 96], strides = [1, 1]} : vector<2x128xf32> to vector<2x96xf32>
    %33 = arith.negf %32 : vector<2x96xf32>
    %34 = math.exp %33 : vector<2x96xf32>
    %cst_14 = arith.constant 1.000000e+00 : f32
    %35 = vector.broadcast %cst_14 : f32 to vector<2x96xf32>
    %36 = arith.addf %35, %34 : vector<2x96xf32>
    %37 = arith.divf %35, %36 : vector<2x96xf32>
    %38 = vector.extract_strided_slice %31 {offsets = [0, 96], sizes = [2, 32], strides = [1, 1]} : vector<2x128xf32> to vector<2x32xf32>
    %39 = math.tanh %38 : vector<2x32xf32>
    %40 = vector.extract_strided_slice %37 {offsets = [0, 0], sizes = [2, 32], strides = [1, 1]} : vector<2x96xf32> to vector<2x32xf32>
    %41 = vector.extract_strided_slice %37 {offsets = [0, 32], sizes = [2, 32], strides = [1, 1]} : vector<2x96xf32> to vector<2x32xf32>
    %42 = vector.extract_strided_slice %37 {offsets = [0, 64], sizes = [2, 32], strides = [1, 1]} : vector<2x96xf32> to vector<2x32xf32>
    %43 = arith.mulf %41, %25 : vector<2x32xf32>
    %44 = arith.mulf %40, %39 : vector<2x32xf32>
    %45 = arith.addf %43, %44 : vector<2x32xf32>
    %46 = math.tanh %45 : vector<2x32xf32>
    %47 = arith.mulf %42, %46 : vector<2x32xf32>
    %c2 = arith.constant 2 : index
    %c0_15 = arith.constant 0 : index
    %48 = vector.load %arg9[%c2, %c0_15] : memref<16x32xf32, #tpu.memory_space<vmem>>, vector<2x32xf32>
    tpu.vector_store %arg9[%c2, %c0_15], %47 {strides = array<i32>} : memref<16x32xf32, #tpu.memory_space<vmem>>, vector<2x32xf32>,
    %49 = vector.extract_strided_slice %6 {offsets = [4, 0], sizes = [2, 128], strides = [1, 1]} : vector<16x128xf32> to vector<2x128xf32>
    %cst_16 = arith.constant dense<0.000000e+00> : vector<2x128xf32>
    %50 = tpu.matmul %47, %1, %cst_16 {dimension_numbers = #tpu.dot_dimension_numbers<[1], [0], [0], [1], [0, 0, 1, 1], [], []>} : vector<2x32xf32>, vector<32x128xf32>, vector<2x128xf32> -> vector<2x128xf32>
    %51 = arith.addf %49, %50 : vector<2x128xf32>
    %52 = vector.extract_strided_slice %51 {offsets = [0, 0], sizes = [2, 96], strides = [1, 1]} : vector<2x128xf32> to vector<2x96xf32>
    %53 = arith.negf %52 : vector<2x96xf32>
    %54 = math.exp %53 : vector<2x96xf32>
    %cst_17 = arith.constant 1.000000e+00 : f32
    %55 = vector.broadcast %cst_17 : f32 to vector<2x96xf32>
    %56 = arith.addf %55, %54 : vector<2x96xf32>
    %57 = arith.divf %55, %56 : vector<2x96xf32>
    %58 = vector.extract_strided_slice %51 {offsets = [0, 96], sizes = [2, 32], strides = [1, 1]} : vector<2x128xf32> to vector<2x32xf32>
    %59 = math.tanh %58 : vector<2x32xf32>
    %60 = vector.extract_strided_slice %57 {offsets = [0, 0], sizes = [2, 32], strides = [1, 1]} : vector<2x96xf32> to vector<2x32xf32>
    %61 = vector.extract_strided_slice %57 {offsets = [0, 32], sizes = [2, 32], strides = [1, 1]} : vector<2x96xf32> to vector<2x32xf32>
    %62 = vector.extract_strided_slice %57 {offsets = [0, 64], sizes = [2, 32], strides = [1, 1]} : vector<2x96xf32> to vector<2x32xf32>
    %63 = arith.mulf %61, %45 : vector<2x32xf32>
    %64 = arith.mulf %60, %59 : vector<2x32xf32>
    %65 = arith.addf %63, %64 : vector<2x32xf32>
    %66 = math.tanh %65 : vector<2x32xf32>
    %67 = arith.mulf %62, %66 : vector<2x32xf32>
    %c4 = arith.constant 4 : index
    %c0_18 = arith.constant 0 : index
    %68 = vector.load %arg9[%c4, %c0_18] : memref<16x32xf32, #tpu.memory_space<vmem>>, vector<2x32xf32>
    tpu.vector_store %arg9[%c4, %c0_18], %67 {strides = array<i32>} : memref<16x32xf32, #tpu.memory_space<vmem>>, vector<2x32xf32>,
    %69 = vector.extract_strided_slice %6 {offsets = [6, 0], sizes = [2, 128], strides = [1, 1]} : vector<16x128xf32> to vector<2x128xf32>
    %cst_19 = arith.constant dense<0.000000e+00> : vector<2x128xf32>
    %70 = tpu.matmul %67, %1, %cst_19 {dimension_numbers = #tpu.dot_dimension_numbers<[1], [0], [0], [1], [0, 0, 1, 1], [], []>} : vector<2x32xf32>, vector<32x128xf32>, vector<2x128xf32> -> vector<2x128xf32>
    %71 = arith.addf %69, %70 : vector<2x128xf32>
    %72 = vector.extract_strided_slice %71 {offsets = [0, 0], sizes = [2, 96], strides = [1, 1]} : vector<2x128xf32> to vector<2x96xf32>
    %73 = arith.negf %72 : vector<2x96xf32>
    %74 = math.exp %73 : vector<2x96xf32>
    %cst_20 = arith.constant 1.000000e+00 : f32
    %75 = vector.broadcast %cst_20 : f32 to vector<2x96xf32>
    %76 = arith.addf %75, %74 : vector<2x96xf32>
    %77 = arith.divf %75, %76 : vector<2x96xf32>
    %78 = vector.extract_strided_slice %71 {offsets = [0, 96], sizes = [2, 32], strides = [1, 1]} : vector<2x128xf32> to vector<2x32xf32>
    %79 = math.tanh %78 : vector<2x32xf32>
    %80 = vector.extract_strided_slice %77 {offsets = [0, 0], sizes = [2, 32], strides = [1, 1]} : vector<2x96xf32> to vector<2x32xf32>
    %81 = vector.extract_strided_slice %77 {offsets = [0, 32], sizes = [2, 32], strides = [1, 1]} : vector<2x96xf32> to vector<2x32xf32>
    %82 = vector.extract_strided_slice %77 {offsets = [0, 64], sizes = [2, 32], strides = [1, 1]} : vector<2x96xf32> to vector<2x32xf32>
    %83 = arith.mulf %81, %65 : vector<2x32xf32>
    %84 = arith.mulf %80, %79 : vector<2x32xf32>
    %85 = arith.addf %83, %84 : vector<2x32xf32>
    %86 = math.tanh %85 : vector<2x32xf32>
    %87 = arith.mulf %82, %86 : vector<2x32xf32>
    %c6 = arith.constant 6 : index
    %c0_21 = arith.constant 0 : index
    %88 = vector.load %arg9[%c6, %c0_21] : memref<16x32xf32, #tpu.memory_space<vmem>>, vector<2x32xf32>
    tpu.vector_store %arg9[%c6, %c0_21], %87 {strides = array<i32>} : memref<16x32xf32, #tpu.memory_space<vmem>>, vector<2x32xf32>,
    %89 = vector.extract_strided_slice %6 {offsets = [8, 0], sizes = [2, 128], strides = [1, 1]} : vector<16x128xf32> to vector<2x128xf32>
    %cst_22 = arith.constant dense<0.000000e+00> : vector<2x128xf32>
    %90 = tpu.matmul %87, %1, %cst_22 {dimension_numbers = #tpu.dot_dimension_numbers<[1], [0], [0], [1], [0, 0, 1, 1], [], []>} : vector<2x32xf32>, vector<32x128xf32>, vector<2x128xf32> -> vector<2x128xf32>
    %91 = arith.addf %89, %90 : vector<2x128xf32>
    %92 = vector.extract_strided_slice %91 {offsets = [0, 0], sizes = [2, 96], strides = [1, 1]} : vector<2x128xf32> to vector<2x96xf32>
    %93 = arith.negf %92 : vector<2x96xf32>
    %94 = math.exp %93 : vector<2x96xf32>
    %cst_23 = arith.constant 1.000000e+00 : f32
    %95 = vector.broadcast %cst_23 : f32 to vector<2x96xf32>
    %96 = arith.addf %95, %94 : vector<2x96xf32>
    %97 = arith.divf %95, %96 : vector<2x96xf32>
    %98 = vector.extract_strided_slice %91 {offsets = [0, 96], sizes = [2, 32], strides = [1, 1]} : vector<2x128xf32> to vector<2x32xf32>
    %99 = math.tanh %98 : vector<2x32xf32>
    %100 = vector.extract_strided_slice %97 {offsets = [0, 0], sizes = [2, 32], strides = [1, 1]} : vector<2x96xf32> to vector<2x32xf32>
    %101 = vector.extract_strided_slice %97 {offsets = [0, 32], sizes = [2, 32], strides = [1, 1]} : vector<2x96xf32> to vector<2x32xf32>
    %102 = vector.extract_strided_slice %97 {offsets = [0, 64], sizes = [2, 32], strides = [1, 1]} : vector<2x96xf32> to vector<2x32xf32>
    %103 = arith.mulf %101, %85 : vector<2x32xf32>
    %104 = arith.mulf %100, %99 : vector<2x32xf32>
    %105 = arith.addf %103, %104 : vector<2x32xf32>
    %106 = math.tanh %105 : vector<2x32xf32>
    %107 = arith.mulf %102, %106 : vector<2x32xf32>
    %c8 = arith.constant 8 : index
    %c0_24 = arith.constant 0 : index
    %108 = vector.load %arg9[%c8, %c0_24] : memref<16x32xf32, #tpu.memory_space<vmem>>, vector<2x32xf32>
    tpu.vector_store %arg9[%c8, %c0_24], %107 {strides = array<i32>} : memref<16x32xf32, #tpu.memory_space<vmem>>, vector<2x32xf32>,
    %109 = vector.extract_strided_slice %6 {offsets = [10, 0], sizes = [2, 128], strides = [1, 1]} : vector<16x128xf32> to vector<2x128xf32>
    %cst_25 = arith.constant dense<0.000000e+00> : vector<2x128xf32>
    %110 = tpu.matmul %107, %1, %cst_25 {dimension_numbers = #tpu.dot_dimension_numbers<[1], [0], [0], [1], [0, 0, 1, 1], [], []>} : vector<2x32xf32>, vector<32x128xf32>, vector<2x128xf32> -> vector<2x128xf32>
    %111 = arith.addf %109, %110 : vector<2x128xf32>
    %112 = vector.extract_strided_slice %111 {offsets = [0, 0], sizes = [2, 96], strides = [1, 1]} : vector<2x128xf32> to vector<2x96xf32>
    %113 = arith.negf %112 : vector<2x96xf32>
    %114 = math.exp %113 : vector<2x96xf32>
    %cst_26 = arith.constant 1.000000e+00 : f32
    %115 = vector.broadcast %cst_26 : f32 to vector<2x96xf32>
    %116 = arith.addf %115, %114 : vector<2x96xf32>
    %117 = arith.divf %115, %116 : vector<2x96xf32>
    %118 = vector.extract_strided_slice %111 {offsets = [0, 96], sizes = [2, 32], strides = [1, 1]} : vector<2x128xf32> to vector<2x32xf32>
    %119 = math.tanh %118 : vector<2x32xf32>
    %120 = vector.extract_strided_slice %117 {offsets = [0, 0], sizes = [2, 32], strides = [1, 1]} : vector<2x96xf32> to vector<2x32xf32>
    %121 = vector.extract_strided_slice %117 {offsets = [0, 32], sizes = [2, 32], strides = [1, 1]} : vector<2x96xf32> to vector<2x32xf32>
    %122 = vector.extract_strided_slice %117 {offsets = [0, 64], sizes = [2, 32], strides = [1, 1]} : vector<2x96xf32> to vector<2x32xf32>
    %123 = arith.mulf %121, %105 : vector<2x32xf32>
    %124 = arith.mulf %120, %119 : vector<2x32xf32>
    %125 = arith.addf %123, %124 : vector<2x32xf32>
    %126 = math.tanh %125 : vector<2x32xf32>
    %127 = arith.mulf %122, %126 : vector<2x32xf32>
    %c10 = arith.constant 10 : index
    %c0_27 = arith.constant 0 : index
    %128 = vector.load %arg9[%c10, %c0_27] : memref<16x32xf32, #tpu.memory_space<vmem>>, vector<2x32xf32>
    tpu.vector_store %arg9[%c10, %c0_27], %127 {strides = array<i32>} : memref<16x32xf32, #tpu.memory_space<vmem>>, vector<2x32xf32>,
    %129 = vector.extract_strided_slice %6 {offsets = [12, 0], sizes = [2, 128], strides = [1, 1]} : vector<16x128xf32> to vector<2x128xf32>
    %cst_28 = arith.constant dense<0.000000e+00> : vector<2x128xf32>
    %130 = tpu.matmul %127, %1, %cst_28 {dimension_numbers = #tpu.dot_dimension_numbers<[1], [0], [0], [1], [0, 0, 1, 1], [], []>} : vector<2x32xf32>, vector<32x128xf32>, vector<2x128xf32> -> vector<2x128xf32>
    %131 = arith.addf %129, %130 : vector<2x128xf32>
    %132 = vector.extract_strided_slice %131 {offsets = [0, 0], sizes = [2, 96], strides = [1, 1]} : vector<2x128xf32> to vector<2x96xf32>
    %133 = arith.negf %132 : vector<2x96xf32>
    %134 = math.exp %133 : vector<2x96xf32>
    %cst_29 = arith.constant 1.000000e+00 : f32
    %135 = vector.broadcast %cst_29 : f32 to vector<2x96xf32>
    %136 = arith.addf %135, %134 : vector<2x96xf32>
    %137 = arith.divf %135, %136 : vector<2x96xf32>
    %138 = vector.extract_strided_slice %131 {offsets = [0, 96], sizes = [2, 32], strides = [1, 1]} : vector<2x128xf32> to vector<2x32xf32>
    %139 = math.tanh %138 : vector<2x32xf32>
    %140 = vector.extract_strided_slice %137 {offsets = [0, 0], sizes = [2, 32], strides = [1, 1]} : vector<2x96xf32> to vector<2x32xf32>
    %141 = vector.extract_strided_slice %137 {offsets = [0, 32], sizes = [2, 32], strides = [1, 1]} : vector<2x96xf32> to vector<2x32xf32>
    %142 = vector.extract_strided_slice %137 {offsets = [0, 64], sizes = [2, 32], strides = [1, 1]} : vector<2x96xf32> to vector<2x32xf32>
    %143 = arith.mulf %141, %125 : vector<2x32xf32>
    %144 = arith.mulf %140, %139 : vector<2x32xf32>
    %145 = arith.addf %143, %144 : vector<2x32xf32>
    %146 = math.tanh %145 : vector<2x32xf32>
    %147 = arith.mulf %142, %146 : vector<2x32xf32>
    %c12 = arith.constant 12 : index
    %c0_30 = arith.constant 0 : index
    %148 = vector.load %arg9[%c12, %c0_30] : memref<16x32xf32, #tpu.memory_space<vmem>>, vector<2x32xf32>
    tpu.vector_store %arg9[%c12, %c0_30], %147 {strides = array<i32>} : memref<16x32xf32, #tpu.memory_space<vmem>>, vector<2x32xf32>,
    %149 = vector.extract_strided_slice %6 {offsets = [14, 0], sizes = [2, 128], strides = [1, 1]} : vector<16x128xf32> to vector<2x128xf32>
    %cst_31 = arith.constant dense<0.000000e+00> : vector<2x128xf32>
    %150 = tpu.matmul %147, %1, %cst_31 {dimension_numbers = #tpu.dot_dimension_numbers<[1], [0], [0], [1], [0, 0, 1, 1], [], []>} : vector<2x32xf32>, vector<32x128xf32>, vector<2x128xf32> -> vector<2x128xf32>
    %151 = arith.addf %149, %150 : vector<2x128xf32>
    %152 = vector.extract_strided_slice %151 {offsets = [0, 0], sizes = [2, 96], strides = [1, 1]} : vector<2x128xf32> to vector<2x96xf32>
    %153 = arith.negf %152 : vector<2x96xf32>
    %154 = math.exp %153 : vector<2x96xf32>
    %cst_32 = arith.constant 1.000000e+00 : f32
    %155 = vector.broadcast %cst_32 : f32 to vector<2x96xf32>
    %156 = arith.addf %155, %154 : vector<2x96xf32>
    %157 = arith.divf %155, %156 : vector<2x96xf32>
    %158 = vector.extract_strided_slice %151 {offsets = [0, 96], sizes = [2, 32], strides = [1, 1]} : vector<2x128xf32> to vector<2x32xf32>
    %159 = math.tanh %158 : vector<2x32xf32>
    %160 = vector.extract_strided_slice %157 {offsets = [0, 0], sizes = [2, 32], strides = [1, 1]} : vector<2x96xf32> to vector<2x32xf32>
    %161 = vector.extract_strided_slice %157 {offsets = [0, 32], sizes = [2, 32], strides = [1, 1]} : vector<2x96xf32> to vector<2x32xf32>
    %162 = vector.extract_strided_slice %157 {offsets = [0, 64], sizes = [2, 32], strides = [1, 1]} : vector<2x96xf32> to vector<2x32xf32>
    %163 = arith.mulf %161, %145 : vector<2x32xf32>
    %164 = arith.mulf %160, %159 : vector<2x32xf32>
    %165 = arith.addf %163, %164 : vector<2x32xf32>
    %166 = math.tanh %165 : vector<2x32xf32>
    %167 = arith.mulf %162, %166 : vector<2x32xf32>
    %c14 = arith.constant 14 : index
    %c0_33 = arith.constant 0 : index
    %168 = vector.load %arg9[%c14, %c0_33] : memref<16x32xf32, #tpu.memory_space<vmem>>, vector<2x32xf32>
    tpu.vector_store %arg9[%c14, %c0_33], %167 {strides = array<i32>} : memref<16x32xf32, #tpu.memory_space<vmem>>, vector<2x32xf32>,
    %c0_34 = arith.constant 0 : index
    %c0_35 = arith.constant 0 : index
    %c0_36 = arith.constant 0 : index
    %169 = vector.load %arg7[%c0_34, %c0_35, %c0_36] : memref<2x2x32xf32, #tpu.memory_space<vmem>>, vector<1x2x32xf32>
    %170 = vector.shape_cast %169 : vector<1x2x32xf32> to vector<2x32xf32>
    %171 = vector.shape_cast %167 : vector<2x32xf32> to vector<1x2x32xf32>
    tpu.vector_store %arg7[%c0_34, %c0_35, %c0_36], %171 {strides = array<i32>} : memref<2x2x32xf32, #tpu.memory_space<vmem>>, vector<1x2x32xf32>,
    %c0_37 = arith.constant 0 : index
    %c0_38 = arith.constant 0 : index
    %c0_39 = arith.constant 0 : index
    %172 = vector.load %arg8[%c0_37, %c0_38, %c0_39] : memref<2x2x32xf32, #tpu.memory_space<vmem>>, vector<1x2x32xf32>
    %173 = vector.shape_cast %172 : vector<1x2x32xf32> to vector<2x32xf32>
    %174 = vector.shape_cast %165 : vector<2x32xf32> to vector<1x2x32xf32>
    tpu.vector_store %arg8[%c0_37, %c0_38, %c0_39], %174 {strides = array<i32>} : memref<2x2x32xf32, #tpu.memory_space<vmem>>, vector<1x2x32xf32>,
    %c0_40 = arith.constant 0 : index
    %c0_41 = arith.constant 0 : index
    %175 = vector.load %arg4[%c0_40, %c0_41] : memref<32x128xf32, #tpu.memory_space<vmem>>, vector<32x128xf32>
    %c0_42 = arith.constant 0 : index
    %c0_43 = arith.constant 0 : index
    %176 = vector.load %arg5[%c0_42, %c0_43] : memref<32x128xf32, #tpu.memory_space<vmem>>, vector<32x128xf32>
    %c0_44 = arith.constant 0 : index
    %c0_45 = arith.constant 0 : index
    %177 = vector.load %arg6[%c0_44, %c0_45] : memref<1x128xf32, #tpu.memory_space<vmem>>, vector<1x128xf32>
    %c0_46 = arith.constant 0 : index
    %c0_47 = arith.constant 0 : index
    %178 = vector.load %arg9[%c0_46, %c0_47] : memref<16x32xf32, #tpu.memory_space<vmem>>, vector<16x32xf32>
    %cst_48 = arith.constant dense<0.000000e+00> : vector<16x128xf32>
    %179 = tpu.matmul %178, %175, %cst_48 {dimension_numbers = #tpu.dot_dimension_numbers<[1], [0], [0], [1], [0, 0, 1, 1], [], []>} : vector<16x32xf32>, vector<32x128xf32>, vector<16x128xf32> -> vector<16x128xf32>
    %180 = vector.broadcast %177 : vector<1x128xf32> to vector<16x128xf32>
    %181 = arith.addf %179, %180 : vector<16x128xf32>
    %cst_49 = arith.constant 0.000000e+00 : f32
    %182 = vector.broadcast %cst_49 : f32 to vector<2x32xf32>
    %cst_50 = arith.constant 0.000000e+00 : f32
    %183 = vector.broadcast %cst_50 : f32 to vector<2x32xf32>
    %184 = vector.extract_strided_slice %181 {offsets = [0, 0], sizes = [2, 128], strides = [1, 1]} : vector<16x128xf32> to vector<2x128xf32>
    %cst_51 = arith.constant dense<0.000000e+00> : vector<2x128xf32>
    %185 = tpu.matmul %182, %176, %cst_51 {dimension_numbers = #tpu.dot_dimension_numbers<[1], [0], [0], [1], [0, 0, 1, 1], [], []>} : vector<2x32xf32>, vector<32x128xf32>, vector<2x128xf32> -> vector<2x128xf32>
    %186 = arith.addf %184, %185 : vector<2x128xf32>
    %187 = vector.extract_strided_slice %186 {offsets = [0, 0], sizes = [2, 96], strides = [1, 1]} : vector<2x128xf32> to vector<2x96xf32>
    %188 = arith.negf %187 : vector<2x96xf32>
    %189 = math.exp %188 : vector<2x96xf32>
    %cst_52 = arith.constant 1.000000e+00 : f32
    %190 = vector.broadcast %cst_52 : f32 to vector<2x96xf32>
    %191 = arith.addf %190, %189 : vector<2x96xf32>
    %192 = arith.divf %190, %191 : vector<2x96xf32>
    %193 = vector.extract_strided_slice %186 {offsets = [0, 96], sizes = [2, 32], strides = [1, 1]} : vector<2x128xf32> to vector<2x32xf32>
    %194 = math.tanh %193 : vector<2x32xf32>
    %195 = vector.extract_strided_slice %192 {offsets = [0, 0], sizes = [2, 32], strides = [1, 1]} : vector<2x96xf32> to vector<2x32xf32>
    %196 = vector.extract_strided_slice %192 {offsets = [0, 32], sizes = [2, 32], strides = [1, 1]} : vector<2x96xf32> to vector<2x32xf32>
    %197 = vector.extract_strided_slice %192 {offsets = [0, 64], sizes = [2, 32], strides = [1, 1]} : vector<2x96xf32> to vector<2x32xf32>
    %198 = arith.mulf %196, %183 : vector<2x32xf32>
    %199 = arith.mulf %195, %194 : vector<2x32xf32>
    %200 = arith.addf %198, %199 : vector<2x32xf32>
    %201 = math.tanh %200 : vector<2x32xf32>
    %202 = arith.mulf %197, %201 : vector<2x32xf32>
    %203 = vector.extract_strided_slice %181 {offsets = [2, 0], sizes = [2, 128], strides = [1, 1]} : vector<16x128xf32> to vector<2x128xf32>
    %cst_53 = arith.constant dense<0.000000e+00> : vector<2x128xf32>
    %204 = tpu.matmul %202, %176, %cst_53 {dimension_numbers = #tpu.dot_dimension_numbers<[1], [0], [0], [1], [0, 0, 1, 1], [], []>} : vector<2x32xf32>, vector<32x128xf32>, vector<2x128xf32> -> vector<2x128xf32>
    %205 = arith.addf %203, %204 : vector<2x128xf32>
    %206 = vector.extract_strided_slice %205 {offsets = [0, 0], sizes = [2, 96], strides = [1, 1]} : vector<2x128xf32> to vector<2x96xf32>
    %207 = arith.negf %206 : vector<2x96xf32>
    %208 = math.exp %207 : vector<2x96xf32>
    %cst_54 = arith.constant 1.000000e+00 : f32
    %209 = vector.broadcast %cst_54 : f32 to vector<2x96xf32>
    %210 = arith.addf %209, %208 : vector<2x96xf32>
    %211 = arith.divf %209, %210 : vector<2x96xf32>
    %212 = vector.extract_strided_slice %205 {offsets = [0, 96], sizes = [2, 32], strides = [1, 1]} : vector<2x128xf32> to vector<2x32xf32>
    %213 = math.tanh %212 : vector<2x32xf32>
    %214 = vector.extract_strided_slice %211 {offsets = [0, 0], sizes = [2, 32], strides = [1, 1]} : vector<2x96xf32> to vector<2x32xf32>
    %215 = vector.extract_strided_slice %211 {offsets = [0, 32], sizes = [2, 32], strides = [1, 1]} : vector<2x96xf32> to vector<2x32xf32>
    %216 = vector.extract_strided_slice %211 {offsets = [0, 64], sizes = [2, 32], strides = [1, 1]} : vector<2x96xf32> to vector<2x32xf32>
    %217 = arith.mulf %215, %200 : vector<2x32xf32>
    %218 = arith.mulf %214, %213 : vector<2x32xf32>
    %219 = arith.addf %217, %218 : vector<2x32xf32>
    %220 = math.tanh %219 : vector<2x32xf32>
    %221 = arith.mulf %216, %220 : vector<2x32xf32>
    %222 = vector.extract_strided_slice %181 {offsets = [4, 0], sizes = [2, 128], strides = [1, 1]} : vector<16x128xf32> to vector<2x128xf32>
    %cst_55 = arith.constant dense<0.000000e+00> : vector<2x128xf32>
    %223 = tpu.matmul %221, %176, %cst_55 {dimension_numbers = #tpu.dot_dimension_numbers<[1], [0], [0], [1], [0, 0, 1, 1], [], []>} : vector<2x32xf32>, vector<32x128xf32>, vector<2x128xf32> -> vector<2x128xf32>
    %224 = arith.addf %222, %223 : vector<2x128xf32>
    %225 = vector.extract_strided_slice %224 {offsets = [0, 0], sizes = [2, 96], strides = [1, 1]} : vector<2x128xf32> to vector<2x96xf32>
    %226 = arith.negf %225 : vector<2x96xf32>
    %227 = math.exp %226 : vector<2x96xf32>
    %cst_56 = arith.constant 1.000000e+00 : f32
    %228 = vector.broadcast %cst_56 : f32 to vector<2x96xf32>
    %229 = arith.addf %228, %227 : vector<2x96xf32>
    %230 = arith.divf %228, %229 : vector<2x96xf32>
    %231 = vector.extract_strided_slice %224 {offsets = [0, 96], sizes = [2, 32], strides = [1, 1]} : vector<2x128xf32> to vector<2x32xf32>
    %232 = math.tanh %231 : vector<2x32xf32>
    %233 = vector.extract_strided_slice %230 {offsets = [0, 0], sizes = [2, 32], strides = [1, 1]} : vector<2x96xf32> to vector<2x32xf32>
    %234 = vector.extract_strided_slice %230 {offsets = [0, 32], sizes = [2, 32], strides = [1, 1]} : vector<2x96xf32> to vector<2x32xf32>
    %235 = vector.extract_strided_slice %230 {offsets = [0, 64], sizes = [2, 32], strides = [1, 1]} : vector<2x96xf32> to vector<2x32xf32>
    %236 = arith.mulf %234, %219 : vector<2x32xf32>
    %237 = arith.mulf %233, %232 : vector<2x32xf32>
    %238 = arith.addf %236, %237 : vector<2x32xf32>
    %239 = math.tanh %238 : vector<2x32xf32>
    %240 = arith.mulf %235, %239 : vector<2x32xf32>
    %241 = vector.extract_strided_slice %181 {offsets = [6, 0], sizes = [2, 128], strides = [1, 1]} : vector<16x128xf32> to vector<2x128xf32>
    %cst_57 = arith.constant dense<0.000000e+00> : vector<2x128xf32>
    %242 = tpu.matmul %240, %176, %cst_57 {dimension_numbers = #tpu.dot_dimension_numbers<[1], [0], [0], [1], [0, 0, 1, 1], [], []>} : vector<2x32xf32>, vector<32x128xf32>, vector<2x128xf32> -> vector<2x128xf32>
    %243 = arith.addf %241, %242 : vector<2x128xf32>
    %244 = vector.extract_strided_slice %243 {offsets = [0, 0], sizes = [2, 96], strides = [1, 1]} : vector<2x128xf32> to vector<2x96xf32>
    %245 = arith.negf %244 : vector<2x96xf32>
    %246 = math.exp %245 : vector<2x96xf32>
    %cst_58 = arith.constant 1.000000e+00 : f32
    %247 = vector.broadcast %cst_58 : f32 to vector<2x96xf32>
    %248 = arith.addf %247, %246 : vector<2x96xf32>
    %249 = arith.divf %247, %248 : vector<2x96xf32>
    %250 = vector.extract_strided_slice %243 {offsets = [0, 96], sizes = [2, 32], strides = [1, 1]} : vector<2x128xf32> to vector<2x32xf32>
    %251 = math.tanh %250 : vector<2x32xf32>
    %252 = vector.extract_strided_slice %249 {offsets = [0, 0], sizes = [2, 32], strides = [1, 1]} : vector<2x96xf32> to vector<2x32xf32>
    %253 = vector.extract_strided_slice %249 {offsets = [0, 32], sizes = [2, 32], strides = [1, 1]} : vector<2x96xf32> to vector<2x32xf32>
    %254 = vector.extract_strided_slice %249 {offsets = [0, 64], sizes = [2, 32], strides = [1, 1]} : vector<2x96xf32> to vector<2x32xf32>
    %255 = arith.mulf %253, %238 : vector<2x32xf32>
    %256 = arith.mulf %252, %251 : vector<2x32xf32>
    %257 = arith.addf %255, %256 : vector<2x32xf32>
    %258 = math.tanh %257 : vector<2x32xf32>
    %259 = arith.mulf %254, %258 : vector<2x32xf32>
    %260 = vector.extract_strided_slice %181 {offsets = [8, 0], sizes = [2, 128], strides = [1, 1]} : vector<16x128xf32> to vector<2x128xf32>
    %cst_59 = arith.constant dense<0.000000e+00> : vector<2x128xf32>
    %261 = tpu.matmul %259, %176, %cst_59 {dimension_numbers = #tpu.dot_dimension_numbers<[1], [0], [0], [1], [0, 0, 1, 1], [], []>} : vector<2x32xf32>, vector<32x128xf32>, vector<2x128xf32> -> vector<2x128xf32>
    %262 = arith.addf %260, %261 : vector<2x128xf32>
    %263 = vector.extract_strided_slice %262 {offsets = [0, 0], sizes = [2, 96], strides = [1, 1]} : vector<2x128xf32> to vector<2x96xf32>
    %264 = arith.negf %263 : vector<2x96xf32>
    %265 = math.exp %264 : vector<2x96xf32>
    %cst_60 = arith.constant 1.000000e+00 : f32
    %266 = vector.broadcast %cst_60 : f32 to vector<2x96xf32>
    %267 = arith.addf %266, %265 : vector<2x96xf32>
    %268 = arith.divf %266, %267 : vector<2x96xf32>
    %269 = vector.extract_strided_slice %262 {offsets = [0, 96], sizes = [2, 32], strides = [1, 1]} : vector<2x128xf32> to vector<2x32xf32>
    %270 = math.tanh %269 : vector<2x32xf32>
    %271 = vector.extract_strided_slice %268 {offsets = [0, 0], sizes = [2, 32], strides = [1, 1]} : vector<2x96xf32> to vector<2x32xf32>
    %272 = vector.extract_strided_slice %268 {offsets = [0, 32], sizes = [2, 32], strides = [1, 1]} : vector<2x96xf32> to vector<2x32xf32>
    %273 = vector.extract_strided_slice %268 {offsets = [0, 64], sizes = [2, 32], strides = [1, 1]} : vector<2x96xf32> to vector<2x32xf32>
    %274 = arith.mulf %272, %257 : vector<2x32xf32>
    %275 = arith.mulf %271, %270 : vector<2x32xf32>
    %276 = arith.addf %274, %275 : vector<2x32xf32>
    %277 = math.tanh %276 : vector<2x32xf32>
    %278 = arith.mulf %273, %277 : vector<2x32xf32>
    %279 = vector.extract_strided_slice %181 {offsets = [10, 0], sizes = [2, 128], strides = [1, 1]} : vector<16x128xf32> to vector<2x128xf32>
    %cst_61 = arith.constant dense<0.000000e+00> : vector<2x128xf32>
    %280 = tpu.matmul %278, %176, %cst_61 {dimension_numbers = #tpu.dot_dimension_numbers<[1], [0], [0], [1], [0, 0, 1, 1], [], []>} : vector<2x32xf32>, vector<32x128xf32>, vector<2x128xf32> -> vector<2x128xf32>
    %281 = arith.addf %279, %280 : vector<2x128xf32>
    %282 = vector.extract_strided_slice %281 {offsets = [0, 0], sizes = [2, 96], strides = [1, 1]} : vector<2x128xf32> to vector<2x96xf32>
    %283 = arith.negf %282 : vector<2x96xf32>
    %284 = math.exp %283 : vector<2x96xf32>
    %cst_62 = arith.constant 1.000000e+00 : f32
    %285 = vector.broadcast %cst_62 : f32 to vector<2x96xf32>
    %286 = arith.addf %285, %284 : vector<2x96xf32>
    %287 = arith.divf %285, %286 : vector<2x96xf32>
    %288 = vector.extract_strided_slice %281 {offsets = [0, 96], sizes = [2, 32], strides = [1, 1]} : vector<2x128xf32> to vector<2x32xf32>
    %289 = math.tanh %288 : vector<2x32xf32>
    %290 = vector.extract_strided_slice %287 {offsets = [0, 0], sizes = [2, 32], strides = [1, 1]} : vector<2x96xf32> to vector<2x32xf32>
    %291 = vector.extract_strided_slice %287 {offsets = [0, 32], sizes = [2, 32], strides = [1, 1]} : vector<2x96xf32> to vector<2x32xf32>
    %292 = vector.extract_strided_slice %287 {offsets = [0, 64], sizes = [2, 32], strides = [1, 1]} : vector<2x96xf32> to vector<2x32xf32>
    %293 = arith.mulf %291, %276 : vector<2x32xf32>
    %294 = arith.mulf %290, %289 : vector<2x32xf32>
    %295 = arith.addf %293, %294 : vector<2x32xf32>
    %296 = math.tanh %295 : vector<2x32xf32>
    %297 = arith.mulf %292, %296 : vector<2x32xf32>
    %298 = vector.extract_strided_slice %181 {offsets = [12, 0], sizes = [2, 128], strides = [1, 1]} : vector<16x128xf32> to vector<2x128xf32>
    %cst_63 = arith.constant dense<0.000000e+00> : vector<2x128xf32>
    %299 = tpu.matmul %297, %176, %cst_63 {dimension_numbers = #tpu.dot_dimension_numbers<[1], [0], [0], [1], [0, 0, 1, 1], [], []>} : vector<2x32xf32>, vector<32x128xf32>, vector<2x128xf32> -> vector<2x128xf32>
    %300 = arith.addf %298, %299 : vector<2x128xf32>
    %301 = vector.extract_strided_slice %300 {offsets = [0, 0], sizes = [2, 96], strides = [1, 1]} : vector<2x128xf32> to vector<2x96xf32>
    %302 = arith.negf %301 : vector<2x96xf32>
    %303 = math.exp %302 : vector<2x96xf32>
    %cst_64 = arith.constant 1.000000e+00 : f32
    %304 = vector.broadcast %cst_64 : f32 to vector<2x96xf32>
    %305 = arith.addf %304, %303 : vector<2x96xf32>
    %306 = arith.divf %304, %305 : vector<2x96xf32>
    %307 = vector.extract_strided_slice %300 {offsets = [0, 96], sizes = [2, 32], strides = [1, 1]} : vector<2x128xf32> to vector<2x32xf32>
    %308 = math.tanh %307 : vector<2x32xf32>
    %309 = vector.extract_strided_slice %306 {offsets = [0, 0], sizes = [2, 32], strides = [1, 1]} : vector<2x96xf32> to vector<2x32xf32>
    %310 = vector.extract_strided_slice %306 {offsets = [0, 32], sizes = [2, 32], strides = [1, 1]} : vector<2x96xf32> to vector<2x32xf32>
    %311 = vector.extract_strided_slice %306 {offsets = [0, 64], sizes = [2, 32], strides = [1, 1]} : vector<2x96xf32> to vector<2x32xf32>
    %312 = arith.mulf %310, %295 : vector<2x32xf32>
    %313 = arith.mulf %309, %308 : vector<2x32xf32>
    %314 = arith.addf %312, %313 : vector<2x32xf32>
    %315 = math.tanh %314 : vector<2x32xf32>
    %316 = arith.mulf %311, %315 : vector<2x32xf32>
    %317 = vector.extract_strided_slice %181 {offsets = [14, 0], sizes = [2, 128], strides = [1, 1]} : vector<16x128xf32> to vector<2x128xf32>
    %cst_65 = arith.constant dense<0.000000e+00> : vector<2x128xf32>
    %318 = tpu.matmul %316, %176, %cst_65 {dimension_numbers = #tpu.dot_dimension_numbers<[1], [0], [0], [1], [0, 0, 1, 1], [], []>} : vector<2x32xf32>, vector<32x128xf32>, vector<2x128xf32> -> vector<2x128xf32>
    %319 = arith.addf %317, %318 : vector<2x128xf32>
    %320 = vector.extract_strided_slice %319 {offsets = [0, 0], sizes = [2, 96], strides = [1, 1]} : vector<2x128xf32> to vector<2x96xf32>
    %321 = arith.negf %320 : vector<2x96xf32>
    %322 = math.exp %321 : vector<2x96xf32>
    %cst_66 = arith.constant 1.000000e+00 : f32
    %323 = vector.broadcast %cst_66 : f32 to vector<2x96xf32>
    %324 = arith.addf %323, %322 : vector<2x96xf32>
    %325 = arith.divf %323, %324 : vector<2x96xf32>
    %326 = vector.extract_strided_slice %319 {offsets = [0, 96], sizes = [2, 32], strides = [1, 1]} : vector<2x128xf32> to vector<2x32xf32>
    %327 = math.tanh %326 : vector<2x32xf32>
    %328 = vector.extract_strided_slice %325 {offsets = [0, 0], sizes = [2, 32], strides = [1, 1]} : vector<2x96xf32> to vector<2x32xf32>
    %329 = vector.extract_strided_slice %325 {offsets = [0, 32], sizes = [2, 32], strides = [1, 1]} : vector<2x96xf32> to vector<2x32xf32>
    %330 = vector.extract_strided_slice %325 {offsets = [0, 64], sizes = [2, 32], strides = [1, 1]} : vector<2x96xf32> to vector<2x32xf32>
    %331 = arith.mulf %329, %314 : vector<2x32xf32>
    %332 = arith.mulf %328, %327 : vector<2x32xf32>
    %333 = arith.addf %331, %332 : vector<2x32xf32>
    %334 = math.tanh %333 : vector<2x32xf32>
    %335 = arith.mulf %330, %334 : vector<2x32xf32>
    %c1 = arith.constant 1 : index
    %c0_67 = arith.constant 0 : index
    %c0_68 = arith.constant 0 : index
    %336 = vector.load %arg7[%c1, %c0_67, %c0_68] : memref<2x2x32xf32, #tpu.memory_space<vmem>>, vector<1x2x32xf32>
    %337 = vector.shape_cast %336 : vector<1x2x32xf32> to vector<2x32xf32>
    %338 = vector.shape_cast %335 : vector<2x32xf32> to vector<1x2x32xf32>
    tpu.vector_store %arg7[%c1, %c0_67, %c0_68], %338 {strides = array<i32>} : memref<2x2x32xf32, #tpu.memory_space<vmem>>, vector<1x2x32xf32>,
    %c1_69 = arith.constant 1 : index
    %c0_70 = arith.constant 0 : index
    %c0_71 = arith.constant 0 : index
    %339 = vector.load %arg8[%c1_69, %c0_70, %c0_71] : memref<2x2x32xf32, #tpu.memory_space<vmem>>, vector<1x2x32xf32>
    %340 = vector.shape_cast %339 : vector<1x2x32xf32> to vector<2x32xf32>
    %341 = vector.shape_cast %333 : vector<2x32xf32> to vector<1x2x32xf32>
    tpu.vector_store %arg8[%c1_69, %c0_70, %c0_71], %341 {strides = array<i32>} : memref<2x2x32xf32, #tpu.memory_space<vmem>>, vector<1x2x32xf32>,
    return
  }
}

</mosaic_0001>

<bundles_post_ra>
// kernel: rnn_forward.1
= control target key start
LH: loop header
LB: loop body
LE: loop exit
PB: predicated region body
PF: predicated region fallthrough
CT: control target
= control target key end

     0   :  { %vm41_vm0 = vcmask 130048   ;;  %s1805_s0 = inlined_call_operand.vmem [shape: f32[16,16], index: 0, kind: input, shape index: {}]   ;;  %s1806_s1 = inlined_call_operand.vmem [shape: f32[16,128], index: 1, kind: input, shape index: {}]   ;;  %s1807_s2 = inlined_call_operand.vmem [shape: f32[32,128], index: 2, kind: input, shape index: {}]   ;;  %s1808_s3 = inlined_call_operand.vmem [shape: f32[1,128], index: 3, kind: input, shape index: {}]   ;;  %s1809_s4 = inlined_call_operand.vmem [shape: f32[32,128], index: 4, kind: input, shape index: {}]   ;;  %s1810_s5 = inlined_call_operand.vmem [shape: f32[32,128], index: 5, kind: input, shape index: {}]   ;;  %s1811_s6 = inlined_call_operand.vmem [shape: f32[1,128], index: 6, kind: input, shape index: {}]   ;;  %s1812_s7 = inlined_call_operand.vmem [shape: f32[2,2,32], index: 7, kind: output, shape index: {0}]   ;;  %s1813_s8 = inlined_call_operand.hbm [shape: f32[2,2,32], index: 8, kind: output, shape index: {1}]  }
   0x1   :  { %v34_v0 = vld [vmem:[%s1807_s2 + $0x18] sm:$0xff]  ;;  %v30_v1 = vld [vmem:[%s1806_s1 + $0x8] sm:$0xff]  ;;  %v33_v2 = vld [vmem:[%s1807_s2 + $0x10] sm:$0xff] }
   0x2   :  { %87 = vmatpush.msra.mxu1 %v34_v0  ;;  %62 = vmatpush.msra.mxu0 %v30_v1  ;;  %v29_v3 = vld [vmem:[%s1806_s1] sm:$0xff]  ;;  %v32_v5 = vld [vmem:[%s1807_s2 + $0x8] sm:$0xff] }
   0x3   :  { %v36_v4 = vld [vmem:[%s1805_s0] sm:$0xff]  ;;  %153 = vmatpush.msra.mxu2 %v34_v0  ;;  %228 = vmatpush.msra.mxu3 %v34_v0 }
   0x4   :  { %88 = vmatpush.msra.mxu1 %v33_v2  ;;  %63 = vmatpush.msra.mxu0 %v29_v3 }
   0x5   :  { %14 = vsyncpa [#allocation4], 0  ;;  %1277 = vmatmul.msk.f32.vlgmr.msra.gmra.mxu0 %vm41_vm0, %v36_v4  ;;  %v31_v6 = vld [vmem:[%s1807_s2] sm:$0xff]  ;;  %154 = vmatpush.msra.mxu2 %v33_v2  ;;  %v1474_v7 = vmov 0.0   ;;  %s1475_s19 = smov 32   ;;  %vm137_vm5 = vcmask 254976  }
   0x6   :  { %89 = vmatpush.msra.mxu1 %v32_v5  ;;  %229 = vmatpush.msra.mxu3 %v33_v2  ;;  %v1551_v8 = vld [vmem:[%s1808_s3] ss:$0 sm:$0xff]  ;;  %s1476_s3 = smov 64   ;;  %vm71_vm6 = vcmask 261120   ;;  %s1477_s16 = smov 96  }
   0x7   :  { %155 = vmatpush.msra.mxu2 %v32_v5  ;;  %520 = vmatpush.msrb.mxu0 %v34_v0  ;;  %s1478_s17 = smov [#allocation3]   ;;  %s1263_s20 = sshll.u32 %s1813_s8, 4  ;;  %s1264_s20 = int_to_ptr.hbm [resolvable:$true] %s1263_s20 }
   0x8   :  { %90 = vmatpush.msra.mxu1 %v31_v6  ;;  %230 = vmatpush.msra.mxu3 %v32_v5  ;;  %s1261_s18 = sshll.u32 %s1478_s17, 4  ;;  %s1479_s21 = smov 2   ;;  %s1262_s18 = int_to_ptr.vmem [resolvable:$true] %s1261_s18 }
   0x9   :  { %91 = vmatmul.f32.vlgmr.msra.gmra.mxu1 %v1474_v7  ;;  %156 = vmatpush.msra.mxu2 %v31_v6 }
   0xa   :  { %231 = vmatpush.msra.mxu3 %v31_v6  ;;  %303 = vmatpush.msrb.mxu1 %v34_v0 }
   0xb   :  { %378 = vmatpush.msrb.mxu2 %v34_v0  ;;  %521 = vmatpush.msrb.mxu0 %v33_v2 }
   0xc   :  { %446 = vmatpush.msrb.mxu3 %v34_v0  ;;  %304 = vmatpush.msrb.mxu1 %v33_v2 }
   0xd   :  { %379 = vmatpush.msrb.mxu2 %v33_v2  ;;  %522 = vmatpush.msrb.mxu0 %v32_v5 }
   0xe   :  { %447 = vmatpush.msrb.mxu3 %v33_v2  ;;  %305 = vmatpush.msrb.mxu1 %v32_v5 }
   0xf   :  { %380 = vmatpush.msrb.mxu2 %v32_v5  ;;  %523 = vmatpush.msrb.mxu0 %v31_v6 }
  0x10   :  { %448 = vmatpush.msrb.mxu3 %v32_v5  ;;  %306 = vmatpush.msrb.mxu1 %v31_v6 }
  0x11   :  { %381 = vmatpush.msrb.mxu2 %v31_v6 }
  0x12   :  { %449 = vmatpush.msrb.mxu3 %v31_v6  ;;  %594 = vmatpush.msra.mxu1 %v34_v0 }
  0x14   :  { %595 = vmatpush.msra.mxu1 %v33_v2 }
  0x16   :  { %596 = vmatpush.msra.mxu1 %v32_v5 }
  0x18   :  { %597 = vmatpush.msra.mxu1 %v31_v6 }
  0x82   :  { %v65_v9 = vpop.f32.mrf.mxu0 }
  0x83   :  { %v1554_v10 = vadd.f32 %v1551_v8, %v65_v9 }
  0x86   :  { %v92_v11 = vpop.f32.mrf.mxu1 }
  0x87   :  { %v95_v12 = vadd.f32 %v92_v11, %v1554_v10 }
  0x89   :  { %1320 = vtanh.f32 %v95_v12  ;;  %v1279_v14 = vmul.f32 -1.442695, %v95_v12 }
  0x8b   :  { %1322 = vpow2.f32 %v1279_v14 }
  0x8f   :  { %v1321_v13 = vpop.eup %1320 }
  0x90   :  { %118 = vrot.lane.b32.xlu0 %v1321_v13, %s1475_s19 }
  0x91   :  { %v1323_v15 = vpop.eup %1322 }
  0x92   :  { %v99_v16 = vadd.f32 1.0, %v1323_v15 }
  0x94   :  { %1324 = vrcp.f32 %v99_v16  ;;  %v111_v22 = vand.u32 2147483648, %v99_v16  ;;  %vm105_vm2 = vweird.f32 %v99_v16  ;;  %v109_v23 = vand.u32 2147483647, %v99_v16 }
  0x96   :  { %v112_v25 = vor.u32 1.1754944e-38, %v111_v22  ;;  %vm110_vm4 = vcmp.eq.f32.partialorder %v109_v23, 8.507059e+37 }
  0x9a   :  { %v1325_v17 = vpop.eup %1324 }
  0x9b   :  { %v101_v18 = vmul.f32 %v1325_v17, %v99_v16  ;;  %vm106_vm1 = vweird.f32 %v1325_v17 }
  0x9c   :  { %vm107_vm3 = vmor %vm105_vm2, %vm106_vm1 }
  0x9d   :  { %v102_v19 = vsub.f32 1.0, %v101_v18 }
  0x9f   :  { %v103_v20 = vmul.f32 %v1325_v17, %v102_v19 }
  0xa1   :  { %v104_v21 = vadd.f32 %v1325_v17, %v103_v20 }
  0xa3   :  { %v108_v24 = vsel %vm107_vm3, %v1325_v17, %v104_v21 }
  0xa4   :  { %v113_v27 = vsel %vm110_vm4, %v112_v25, %v108_v24 }
  0xa5   :  { %v116_v29 = vmul.f32 0.0, %v113_v27 }
 0x102   :  { %v119_v26 = vpop.permute.xlu0 %118 }
 0x103   :  { %v121_v28 = vmul.f32 %v119_v26, %v113_v27 }
 0x105   :  { %123 = vrot.lane.b32.xlu0 %v121_v28, %s1475_s19 }
 0x177   :  { %v124_v30 = vpop.permute.xlu0 %123 }
 0x178   :  { %v126_v31 = vadd.f32 %v124_v30, %v116_v29 }
 0x17a   :  { %1326 = vtanh.f32 %v126_v31  ;;  %v186_v55 = vrot.slane %v126_v31, 6 }
 0x180   :  { %v1327_v32 = vpop.eup %1326 }
 0x181   :  { %129 = vrot.lane.b32.xlu1 %v1327_v32, %s1475_s19 }
 0x1f3   :  { %v130_v33 = vpop.permute.xlu1 %129 }
 0x1f4   :  { %v132_v34 = vmul.f32 %v130_v33, %v113_v27 }
 0x1f6   :  { %134 = vrot.lane.b32.xlu1 %v132_v34, %s1476_s3 }
 0x268   :  { %v135_v35 = vpop.permute.xlu1 %134 }
 0x269   :  { %138 = vst.msk [vmem:[#allocation2] sm:$0x3] %vm137_vm5, %v135_v35  ;;  %1280 = vmatmul.msk.f32.vlgmr.msra.gmra.mxu2 %vm71_vm6, %v135_v35 }
 0x2ec   :  { %v158_v36 = vpop.f32.mrf.mxu2 }
 0x2ed   :  { %v162_v37 = vrot.slane %v158_v36, 6 }
 0x2ef   :  { %v164_v38 = vadd.f32 %v162_v37, %v1554_v10 }
 0x2f1   :  { %1328 = vtanh.f32 %v164_v38  ;;  %v1281_v40 = vmul.f32 -1.442695, %v164_v38 }
 0x2f3   :  { %1330 = vpow2.f32 %v1281_v40 }
 0x2f7   :  { %v1329_v39 = vpop.eup %1328 }
 0x2f8   :  { %190 = vrot.lane.b32.xlu2 %v1329_v39, %s1475_s19 }
 0x2f9   :  { %v1331_v41 = vpop.eup %1330 }
 0x2fa   :  { %v168_v42 = vadd.f32 1.0, %v1331_v41 }
 0x2fc   :  { %1332 = vrcp.f32 %v168_v42  ;;  %v180_v48 = vand.u32 2147483648, %v168_v42  ;;  %vm174_vm8 = vweird.f32 %v168_v42  ;;  %v178_v49 = vand.u32 2147483647, %v168_v42 }
 0x2fe   :  { %v181_v51 = vor.u32 1.1754944e-38, %v180_v48  ;;  %vm179_vm10 = vcmp.eq.f32.partialorder %v178_v49, 8.507059e+37 }
 0x302   :  { %v1333_v43 = vpop.eup %1332 }
 0x303   :  { %v170_v44 = vmul.f32 %v1333_v43, %v168_v42  ;;  %vm175_vm7 = vweird.f32 %v1333_v43 }
 0x304   :  { %vm176_vm9 = vmor %vm174_vm8, %vm175_vm7 }
 0x305   :  { %v171_v45 = vsub.f32 1.0, %v170_v44 }
 0x307   :  { %v172_v46 = vmul.f32 %v1333_v43, %v171_v45 }
 0x309   :  { %v173_v47 = vadd.f32 %v1333_v43, %v172_v46 }
 0x30b   :  { %v177_v50 = vsel %vm176_vm9, %v1333_v43, %v173_v47  ;;  %vm209_vm9 = vcmask 257026  }
 0x30c   :  { %v182_v53 = vsel %vm179_vm10, %v181_v51, %v177_v50  ;;  %vm284_vm10 = vcmask 259076  }
 0x30d   :  { %v188_v56 = vmul.f32 %v186_v55, %v182_v53 }
 0x352   :  { %v191_v52 = vpop.permute.xlu2 %190 }
 0x353   :  { %v193_v54 = vmul.f32 %v191_v52, %v182_v53 }
 0x355   :  { %195 = vrot.lane.b32.xlu2 %v193_v54, %s1475_s19 }
 0x3af   :  { %v196_v57 = vpop.permute.xlu2 %195 }
 0x3b0   :  { %v198_v58 = vadd.f32 %v196_v57, %v188_v56  ;;  %v37_v57 = vld [vmem:[%s1805_s0 + $0x8] sm:$0xff] }
 0x3b1   :  { %1278 = vmatmul.msk.f32.gmra.mxu0 %vm41_vm0, %v37_v57 }
 0x3b2   :  { %1334 = vtanh.f32 %v198_v58  ;;  %v261_v22 = vrot.slane %v198_v58, 6 }
 0x3b8   :  { %v1335_v59 = vpop.eup %1334 }
 0x3b9   :  { %201 = vrot.lane.b32.xlu0 %v1335_v59, %s1475_s19 }
 0x42b   :  { %v202_v60 = vpop.permute.xlu0 %201 }
 0x42c   :  { %v1567_v61 = vmul.f32 %v202_v60, %v182_v53 }
 0x42e   :  { %v211_v62 = vrot.slane %v1567_v61, 2  ;;  %v68_v59 = vpop.f32.mrf.mxu0 }
 0x42f   :  { %v1592_v60 = vadd.f32 %v1551_v8, %v68_v59 }
 0x430   :  { %212 = vrot.lane.b32.xlu1 %v211_v62, %s1476_s3 }
 0x4a2   :  { %v213_v63 = vpop.permute.xlu1 %212 }
 0x4a3   :  { %1282 = vmatmul.msk.f32.vlgmr.msra.gmra.mxu3 %vm71_vm6, %v213_v63 }
 0x526   :  { %v233_v0 = vpop.f32.mrf.mxu3 }
 0x527   :  { %v237_v1 = vrot.slane %v233_v0, 4 }
 0x529   :  { %v239_v2 = vadd.f32 %v237_v1, %v1554_v10 }
 0x52b   :  { %1336 = vtanh.f32 %v239_v2  ;;  %v1283_v4 = vmul.f32 -1.442695, %v239_v2 }
 0x52d   :  { %1338 = vpow2.f32 %v1283_v4 }
 0x531   :  { %v1337_v3 = vpop.eup %1336 }
 0x532   :  { %265 = vrot.lane.b32.xlu2 %v1337_v3, %s1475_s19 }
 0x533   :  { %v1339_v5 = vpop.eup %1338 }
 0x534   :  { %v243_v6 = vadd.f32 1.0, %v1339_v5 }
 0x536   :  { %1340 = vrcp.f32 %v243_v6  ;;  %v255_v15 = vand.u32 2147483648, %v243_v6  ;;  %vm249_vm12 = vweird.f32 %v243_v6  ;;  %v253_v16 = vand.u32 2147483647, %v243_v6 }
 0x538   :  { %v256_v18 = vor.u32 1.1754944e-38, %v255_v15  ;;  %vm254_vm14 = vcmp.eq.f32.partialorder %v253_v16, 8.507059e+37 }
 0x53c   :  { %v1341_v9 = vpop.eup %1340 }
 0x53d   :  { %v245_v11 = vmul.f32 %v1341_v9, %v243_v6  ;;  %vm250_vm11 = vweird.f32 %v1341_v9 }
 0x53e   :  { %vm251_vm13 = vmor %vm249_vm12, %vm250_vm11  ;;  %vm359_vm11 = vcmask 261126  }
 0x53f   :  { %v246_v12 = vsub.f32 1.0, %v245_v11 }
 0x541   :  { %v247_v13 = vmul.f32 %v1341_v9, %v246_v12 }
 0x543   :  { %v248_v14 = vadd.f32 %v1341_v9, %v247_v13 }
 0x545   :  { %v252_v17 = vsel %vm251_vm13, %v1341_v9, %v248_v14 }
 0x546   :  { %v257_v20 = vsel %vm254_vm14, %v256_v18, %v252_v17 }
 0x547   :  { %v263_v23 = vmul.f32 %v261_v22, %v257_v20 }
 0x58c   :  { %v266_v19 = vpop.permute.xlu2 %265 }
 0x58d   :  { %v268_v21 = vmul.f32 %v266_v19, %v257_v20 }
 0x58f   :  { %270 = vrot.lane.b32.xlu0 %v268_v21, %s1475_s19 }
 0x601   :  { %v271_v24 = vpop.permute.xlu0 %270 }
 0x602   :  { %v273_v25 = vadd.f32 %v271_v24, %v263_v23 }
 0x604   :  { %1342 = vtanh.f32 %v273_v25  ;;  %v336_v49 = vrot.slane %v273_v25, 6 }
 0x60a   :  { %v1343_v26 = vpop.eup %1342 }
 0x60b   :  { %276 = vrot.lane.b32.xlu1 %v1343_v26, %s1475_s19  ;;  %v660_v26 = vld [vmem:[%s1809_s4 + $0x18] sm:$0xff] }
 0x60c   :  { %689 = vmatpush.msra.mxu2 %v660_v26 }
 0x67d   :  { %v277_v27 = vpop.permute.xlu1 %276 }
 0x67e   :  { %v1576_v28 = vmul.f32 %v277_v27, %v257_v20  ;;  %v659_v27 = vld [vmem:[%s1809_s4 + $0x10] sm:$0xff] }
 0x67f   :  { %690 = vmatpush.msra.mxu2 %v659_v27 }
 0x680   :  { %v286_v29 = vrot.slane %v1576_v28, 4 }
 0x682   :  { %287 = vrot.lane.b32.xlu2 %v286_v29, %s1476_s3  ;;  %v1624_v29 = vld [vmem:[%s1810_s5 + $0x10] sm:$0xff] }
 0x6dc   :  { %v288_v30 = vpop.permute.xlu2 %287 }
 0x6dd   :  { %1284 = vmatmul.msk.f32.vlgmr.msrb.gmra.mxu1 %vm71_vm6, %v288_v30  ;;  %v658_v30 = vld [vmem:[%s1809_s4 + $0x8] sm:$0xff] }
 0x6de   :  { %691 = vmatpush.msra.mxu2 %v658_v30 }
 0x75a   :  { %v308_v31 = vpop.f32.mrf.mxu1 }
 0x75b   :  { %v312_v32 = vrot.slane %v308_v31, 2  ;;  %v1632_v31 = vld [vmem:[%s1810_s5 + $0x8] sm:$0xff] }
 0x75d   :  { %v314_v33 = vadd.f32 %v312_v32, %v1554_v10  ;;  %v657_v32 = vld [vmem:[%s1809_s4] sm:$0xff] }
 0x75e   :  { %692 = vmatpush.msra.mxu2 %v657_v32 }
 0x75f   :  { %1344 = vtanh.f32 %v314_v33  ;;  %v1285_v35 = vmul.f32 -1.442695, %v314_v33  ;;  %v1648_v33 = vld [vmem:[%s1810_s5] sm:$0xff] }
 0x761   :  { %1346 = vpow2.f32 %v1285_v35 }
 0x765   :  { %v1345_v34 = vpop.eup %1344 }
 0x766   :  { %340 = vrot.lane.b32.xlu0 %v1345_v34, %s1475_s19 }
 0x767   :  { %v1347_v36 = vpop.eup %1346 }
 0x768   :  { %v318_v37 = vadd.f32 1.0, %v1347_v36 }
 0x76a   :  { %1348 = vrcp.f32 %v318_v37  ;;  %v330_v43 = vand.u32 2147483648, %v318_v37  ;;  %vm324_vm1 = vweird.f32 %v318_v37  ;;  %v328_v44 = vand.u32 2147483647, %v318_v37 }
 0x76c   :  { %v331_v45 = vor.u32 1.1754944e-38, %v330_v43  ;;  %vm329_vm3 = vcmp.eq.f32.partialorder %v328_v44, 8.507059e+37 }
 0x770   :  { %v1349_v38 = vpop.eup %1348 }
 0x771   :  { %v320_v39 = vmul.f32 %v1349_v38, %v318_v37  ;;  %vm325_vm15 = vweird.f32 %v1349_v38 }
 0x772   :  { %vm326_vm2 = vmor %vm324_vm1, %vm325_vm15 }
 0x773   :  { %v321_v40 = vsub.f32 1.0, %v320_v39 }
 0x775   :  { %v322_v41 = vmul.f32 %v1349_v38, %v321_v40 }
 0x777   :  { %v323_v42 = vadd.f32 %v1349_v38, %v322_v41 }
 0x779   :  { %v327_v10 = vsel %vm326_vm2, %v1349_v38, %v323_v42 }
 0x77a   :  { %v332_v47 = vsel %vm329_vm3, %v331_v45, %v327_v10 }
 0x77b   :  { %v338_v50 = vmul.f32 %v336_v49, %v332_v47 }
 0x7d8   :  { %v341_v46 = vpop.permute.xlu0 %340 }
 0x7d9   :  { %v343_v48 = vmul.f32 %v341_v46, %v332_v47 }
 0x7db   :  { %345 = vrot.lane.b32.xlu1 %v343_v48, %s1475_s19 }
 0x84d   :  { %v346_v51 = vpop.permute.xlu1 %345 }
 0x84e   :  { %v348_v52 = vadd.f32 %v346_v51, %v338_v50 }
 0x850   :  { %1350 = vtanh.f32 %v348_v52  ;;  %v408_v18 = vrot.slane %v348_v52, 6 }
 0x856   :  { %v1351_v53 = vpop.eup %1350 }
 0x857   :  { %351 = vrot.lane.b32.xlu2 %v1351_v53, %s1475_s19 }
 0x8b1   :  { %v352_v54 = vpop.permute.xlu2 %351 }
 0x8b2   :  { %v354_v55 = vmul.f32 %v352_v54, %v332_v47 }
 0x8b4   :  { %v361_v56 = vrot.slane %v354_v55, 6 }
 0x8b6   :  { %362 = vrot.lane.b32.xlu0 %v361_v56, %s1476_s3 }
 0x928   :  { %v363_v58 = vpop.permute.xlu0 %362 }
 0x929   :  { %1286 = vmatmul.msk.f32.vlgmr.msrb.gmra.mxu2 %vm71_vm6, %v363_v58 }
 0x9ac   :  { %v383_v62 = vpop.f32.mrf.mxu2 }
 0x9ad   :  { %v386_v63 = vadd.f32 %v383_v62, %v1592_v60 }
 0x9af   :  { %1352 = vtanh.f32 %v386_v63  ;;  %v1287_v1 = vmul.f32 -1.442695, %v386_v63 }
 0x9b1   :  { %1354 = vpow2.f32 %v1287_v1 }
 0x9b5   :  { %v1353_v0 = vpop.eup %1352 }
 0x9b6   :  { %412 = vrot.lane.b32.xlu1 %v1353_v0, %s1475_s19 }
 0x9b7   :  { %v1355_v2 = vpop.eup %1354 }
 0x9b8   :  { %v390_v3 = vadd.f32 1.0, %v1355_v2 }
 0x9ba   :  { %1356 = vrcp.f32 %v390_v3  ;;  %v402_v8 = vand.u32 2147483648, %v390_v3  ;;  %vm396_vm4 = vweird.f32 %v390_v3  ;;  %v400_v12 = vand.u32 2147483647, %v390_v3 }
 0x9bc   :  { %v403_v14 = vor.u32 1.1754944e-38, %v402_v8  ;;  %vm401_vm8 = vcmp.eq.f32.partialorder %v400_v12, 8.507059e+37 }
 0x9c0   :  { %v1357_v4 = vpop.eup %1356 }
 0x9c1   :  { %v392_v5 = vmul.f32 %v1357_v4, %v390_v3  ;;  %vm397_vm0 = vweird.f32 %v1357_v4 }
 0x9c2   :  { %vm398_vm7 = vmor %vm396_vm4, %vm397_vm0 }
 0x9c3   :  { %v393_v6 = vsub.f32 1.0, %v392_v5 }
 0x9c5   :  { %v394_v9 = vmul.f32 %v1357_v4, %v393_v6 }
 0x9c7   :  { %v395_v11 = vadd.f32 %v1357_v4, %v394_v9 }
 0x9c9   :  { %v399_v13 = vsel %vm398_vm7, %v1357_v4, %v395_v11 }
 0x9ca   :  { %v404_v16 = vsel %vm401_vm8, %v403_v14, %v399_v13 }
 0x9cb   :  { %v410_v19 = vmul.f32 %v408_v18, %v404_v16 }
 0xa28   :  { %v413_v15 = vpop.permute.xlu1 %412 }
 0xa29   :  { %v415_v17 = vmul.f32 %v413_v15, %v404_v16 }
 0xa2b   :  { %417 = vrot.lane.b32.xlu2 %v415_v17, %s1475_s19 }
 0xa33   :  { %206 = vrot.lane.b32.xlu2 %v1567_v61, %s1476_s3 }
 0xa85   :  { %v418_v20 = vpop.permute.xlu2 %417 }
 0xa86   :  { %v1599_v21 = vadd.f32 %v418_v20, %v410_v19 }
 0xa88   :  { %1358 = vtanh.f32 %v1599_v21  ;;  %v479_v15 = vrot.slane %v1599_v21, 6 }
 0xa8d   :  { %v207_v22 = vpop.permute.xlu2 %206 }
 0xa8e   :  { %v1359_v23 = vpop.eup %1358  ;;  %210 = vst.msk [vmem:[#allocation2] sm:$0xc] %vm209_vm9, %v207_v22 }
 0xa8f   :  { %423 = vrot.lane.b32.xlu0 %v1359_v23, %s1475_s19 }
 0xa97   :  { %281 = vrot.lane.b32.xlu0 %v1576_v28, %s1476_s3  ;;  %v1618_v28 = vld [vmem:[%s1810_s5 + $0x18] sm:$0xff] }
 0xa98   :  { %712 = vmatpush.msra.mxu3 %v1618_v28  ;;  %775 = vmatpush.msra.mxu0 %v1618_v28 }
 0xa99   :  { %845 = vmatpush.msrb.mxu1 %v1618_v28  ;;  %1121 = vmatpush.msrb.mxu2 %v1618_v28 }
 0xa9a   :  { %713 = vmatpush.msra.mxu3 %v1624_v29  ;;  %776 = vmatpush.msra.mxu0 %v1624_v29 }
 0xa9b   :  { %846 = vmatpush.msrb.mxu1 %v1624_v29  ;;  %1122 = vmatpush.msrb.mxu2 %v1624_v29 }
 0xa9c   :  { %714 = vmatpush.msra.mxu3 %v1632_v31  ;;  %777 = vmatpush.msra.mxu0 %v1632_v31 }
 0xa9d   :  { %847 = vmatpush.msrb.mxu1 %v1632_v31  ;;  %1123 = vmatpush.msrb.mxu2 %v1632_v31 }
 0xa9e   :  { %715 = vmatpush.msra.mxu3 %v1648_v33  ;;  %778 = vmatpush.msra.mxu0 %v1648_v33 }
 0xa9f   :  { %848 = vmatpush.msrb.mxu1 %v1648_v33  ;;  %1124 = vmatpush.msrb.mxu2 %v1648_v33 }
 0xb01   :  { %v424_v24 = vpop.permute.xlu0 %423 }
 0xb02   :  { %v426_v25 = vmul.f32 %v424_v24, %v404_v16 }
 0xb04   :  { %428 = vrot.lane.b32.xlu1 %v426_v25, %s1476_s3 }
 0xb09   :  { %v282_v61 = vpop.permute.xlu0 %281 }
 0xb0a   :  { %285 = vst.msk [vmem:[#allocation2] sm:$0x30] %vm284_vm10, %v282_v61 }
 0xb0c   :  { %356 = vrot.lane.b32.xlu1 %v354_v55, %s1476_s3 }
 0xb76   :  { %v429_v34 = vpop.permute.xlu1 %428 }
 0xb77   :  { %431 = vst.msk [vmem:[#allocation2 + $0x8] sm:$0x3] %vm137_vm5, %v429_v34  ;;  %1288 = vmatmul.msk.f32.vlgmr.msrb.gmra.mxu3 %vm71_vm6, %v429_v34 }
 0xb78   :  { %915 = vmatpush.msrb.mxu3 %v1618_v28 }
 0xb7a   :  { %916 = vmatpush.msrb.mxu3 %v1624_v29 }
 0xb7c   :  { %917 = vmatpush.msrb.mxu3 %v1632_v31 }
 0xb7e   :  { %v357_v35 = vpop.permute.xlu1 %356  ;;  %918 = vmatpush.msrb.mxu3 %v1648_v33 }
 0xb7f   :  { %360 = vst.msk [vmem:[#allocation2] sm:$0xc0] %vm359_vm11, %v357_v35  ;;  %716 = vmatmul.f32.vlgmr.msra.gmra.mxu3 %v1474_v7  ;;  %v1675_v7 = vld [vmem:[%s1811_s6] ss:$0 sm:$0xff] }
 0xb80   :  { %1191 = vmatpush.msra.mxu3 %v1618_v28 }
 0xb82   :  { %1192 = vmatpush.msra.mxu3 %v1624_v29 }
 0xb84   :  { %1193 = vmatpush.msra.mxu3 %v1632_v31 }
 0xb86   :  { %v666_v36 = vld [vmem:[#allocation2] sm:$0xff]  ;;  %1194 = vmatpush.msra.mxu3 %v1648_v33 }
 0xb87   :  { %1294 = vmatmul.msk.f32.vlgmr.msra.gmra.mxu2 %vm71_vm6, %v666_v36 }
 0xbfa   :  { %v451_v37 = vpop.f32.mrf.mxu3 }
 0xbfb   :  { %v455_v38 = vrot.slane %v451_v37, 6 }
 0xbfd   :  { %v457_v39 = vadd.f32 %v455_v38, %v1592_v60 }
 0xbff   :  { %1360 = vtanh.f32 %v457_v39  ;;  %v1289_v45 = vmul.f32 -1.442695, %v457_v39 }
 0xc02   :  { %v717_v42 = vpop.f32.mrf.mxu3 }
 0xc05   :  { %v1361_v40 = vpop.eup %1360 }
 0xc06   :  { %483 = vrot.lane.b32.xlu2 %v1361_v40, %s1475_s19 }
 0xc0a   :  { %v694_v41 = vpop.f32.mrf.mxu2 }
 0xc0b   :  { %v1678_v43 = vadd.f32 %v1675_v7, %v694_v41 }
 0xc0d   :  { %v720_v44 = vadd.f32 %v717_v42, %v1678_v43 }
 0xc0f   :  { %1362 = vtanh.f32 %v720_v44  ;;  %v1296_v54 = vmul.f32 -1.442695, %v720_v44 }
 0xc10   :  { %1364 = vpow2.f32 %v1289_v45 }
 0xc15   :  { %v1363_v10 = vpop.eup %1362 }
 0xc16   :  { %743 = vrot.lane.b32.xlu0 %v1363_v10, %s1475_s19  ;;  %v1365_v46 = vpop.eup %1364 }
 0xc17   :  { %v461_v47 = vadd.f32 1.0, %v1365_v46 }
 0xc19   :  { %1366 = vrcp.f32 %v461_v47  ;;  %v473_v53 = vand.u32 2147483648, %v461_v47  ;;  %vm467_vm12 = vweird.f32 %v461_v47  ;;  %v471_v55 = vand.u32 2147483647, %v461_v47 }
 0xc1a   :  { %1368 = vpow2.f32 %v1296_v54 }
 0xc1b   :  { %v474_v57 = vor.u32 1.1754944e-38, %v473_v53  ;;  %vm472_vm14 = vcmp.eq.f32.partialorder %v471_v55, 8.507059e+37 }
 0xc1f   :  { %v1367_v48 = vpop.eup %1366 }
 0xc20   :  { %v463_v49 = vmul.f32 %v1367_v48, %v461_v47  ;;  %vm468_vm5 = vweird.f32 %v1367_v48  ;;  %v1369_v63 = vpop.eup %1368 }
 0xc21   :  { %vm469_vm13 = vmor %vm467_vm12, %vm468_vm5  ;;  %v724_v0 = vadd.f32 1.0, %v1369_v63 }
 0xc22   :  { %v464_v50 = vsub.f32 1.0, %v463_v49 }
 0xc23   :  { %1370 = vrcp.f32 %v724_v0  ;;  %v736_v6 = vand.u32 2147483648, %v724_v0  ;;  %vm730_vm1 = vweird.f32 %v724_v0  ;;  %v734_v9 = vand.u32 2147483647, %v724_v0 }
 0xc24   :  { %v465_v51 = vmul.f32 %v1367_v48, %v464_v50 }
 0xc25   :  { %v737_v8 = vor.u32 1.1754944e-38, %v736_v6  ;;  %vm735_vm3 = vcmp.eq.f32.partialorder %v734_v9, 8.507059e+37 }
 0xc26   :  { %v466_v52 = vadd.f32 %v1367_v48, %v465_v51 }
 0xc28   :  { %v470_v56 = vsel %vm469_vm13, %v1367_v48, %v466_v52 }
 0xc29   :  { %v475_v59 = vsel %vm472_vm14, %v474_v57, %v470_v56  ;;  %v1371_v1 = vpop.eup %1370 }
 0xc2a   :  { %v726_v2 = vmul.f32 %v1371_v1, %v724_v0  ;;  %vm731_vm15 = vweird.f32 %v1371_v1  ;;  %v481_v16 = vmul.f32 %v479_v15, %v475_v59 }
 0xc2b   :  { %vm732_vm2 = vmor %vm730_vm1, %vm731_vm15 }
 0xc2c   :  { %v727_v3 = vsub.f32 1.0, %v726_v2 }
 0xc2e   :  { %v728_v4 = vmul.f32 %v1371_v1, %v727_v3 }
 0xc30   :  { %v729_v5 = vadd.f32 %v1371_v1, %v728_v4 }
 0xc32   :  { %v733_v11 = vsel %vm732_vm2, %v1371_v1, %v729_v5 }
 0xc33   :  { %v738_v13 = vsel %vm735_vm3, %v737_v8, %v733_v11 }
 0xc34   :  { %v741_v20 = vmul.f32 0.0, %v738_v13 }
 0xc60   :  { %v484_v58 = vpop.permute.xlu2 %483 }
 0xc61   :  { %v486_v62 = vmul.f32 %v484_v58, %v475_v59 }
 0xc63   :  { %488 = vrot.lane.b32.xlu1 %v486_v62, %s1475_s19 }
 0xc88   :  { %v744_v12 = vpop.permute.xlu0 %743 }
 0xc89   :  { %v746_v14 = vmul.f32 %v744_v12, %v738_v13 }
 0xc8b   :  { %748 = vrot.lane.b32.xlu2 %v746_v14, %s1475_s19 }
 0xcd5   :  { %v489_v17 = vpop.permute.xlu1 %488 }
 0xcd6   :  { %v1685_v18 = vadd.f32 %v489_v17, %v481_v16 }
 0xcd8   :  { %1372 = vtanh.f32 %v1685_v18  ;;  %v553_v12 = vrot.slane %v1685_v18, 6 }
 0xcde   :  { %v1373_v19 = vpop.eup %1372 }
 0xcdf   :  { %494 = vrot.lane.b32.xlu0 %v1373_v19, %s1475_s19 }
 0xce5   :  { %v749_v22 = vpop.permute.xlu2 %748 }
 0xce6   :  { %v1689_v23 = vadd.f32 %v749_v22, %v741_v20 }
 0xce8   :  { %1374 = vtanh.f32 %v1689_v23  ;;  %v808_v17 = vrot.slane %v1689_v23, 6 }
 0xcee   :  { %v1375_v24 = vpop.eup %1374 }
 0xcef   :  { %754 = vrot.lane.b32.xlu1 %v1375_v24, %s1475_s19 }
 0xd51   :  { %v495_v25 = vpop.permute.xlu0 %494 }
 0xd52   :  { %v1693_v21 = vmul.f32 %v495_v25, %v475_v59 }
 0xd54   :  { %v503_v61 = vrot.slane %v1693_v21, 2 }
 0xd56   :  { %504 = vrot.lane.b32.xlu2 %v503_v61, %s1476_s3 }
 0xd61   :  { %v755_v26 = vpop.permute.xlu1 %754 }
 0xd62   :  { %v757_v27 = vmul.f32 %v755_v26, %v738_v13 }
 0xd64   :  { %759 = vrot.lane.b32.xlu0 %v757_v27, %s1476_s3 }
 0xdb0   :  { %v505_v30 = vpop.permute.xlu2 %504 }
 0xdb1   :  { %1290 = vmatmul.msk.f32.vlgmr.msrb.gmra.mxu0 %vm71_vm6, %v505_v30 }
 0xdb2   :  { %985 = vmatpush.msrb.mxu0 %v1618_v28 }
 0xdb4   :  { %986 = vmatpush.msrb.mxu0 %v1624_v29 }
 0xdb6   :  { %987 = vmatpush.msrb.mxu0 %v1632_v31 }
 0xdb8   :  { %988 = vmatpush.msrb.mxu0 %v1648_v33 }
 0xdd6   :  { %v760_v32 = vpop.permute.xlu0 %759 }
 0xdd7   :  { %1297 = vmatmul.msk.f32.vlgmr.msra.gmra.mxu0 %vm71_vm6, %v760_v32 }
 0xe2e   :  { %v525_v34 = vpop.f32.mrf.mxu0 }
 0xe2f   :  { %v529_v35 = vrot.slane %v525_v34, 4 }
 0xe31   :  { %v531_v36 = vadd.f32 %v529_v35, %v1592_v60 }
 0xe33   :  { %1376 = vtanh.f32 %v531_v36  ;;  %v1291_v42 = vmul.f32 -1.442695, %v531_v36 }
 0xe39   :  { %v1377_v37 = vpop.eup %1376 }
 0xe3a   :  { %557 = vrot.lane.b32.xlu1 %v1377_v37, %s1475_s19 }
 0xe54   :  { %v780_v38 = vpop.f32.mrf.mxu0 }
 0xe55   :  { %v784_v39 = vrot.slane %v780_v38, 6 }
 0xe57   :  { %v786_v40 = vadd.f32 %v784_v39, %v1678_v43 }
 0xe59   :  { %1378 = vtanh.f32 %v786_v40  ;;  %v1298_v45 = vmul.f32 -1.442695, %v786_v40 }
 0xe5a   :  { %1380 = vpow2.f32 %v1291_v42 }
 0xe5f   :  { %v1379_v41 = vpop.eup %1378 }
 0xe60   :  { %812 = vrot.lane.b32.xlu2 %v1379_v41, %s1475_s19  ;;  %v1381_v44 = vpop.eup %1380 }
 0xe61   :  { %v535_v10 = vadd.f32 1.0, %v1381_v44 }
 0xe63   :  { %1382 = vrcp.f32 %v535_v10  ;;  %v547_v54 = vand.u32 2147483648, %v535_v10  ;;  %vm541_vm4 = vweird.f32 %v535_v10  ;;  %v545_v55 = vand.u32 2147483647, %v535_v10 }
 0xe64   :  { %1384 = vpow2.f32 %v1298_v45 }
 0xe65   :  { %v548_v58 = vor.u32 1.1754944e-38, %v547_v54  ;;  %vm546_vm8 = vcmp.eq.f32.partialorder %v545_v55, 8.507059e+37 }
 0xe69   :  { %v1383_v46 = vpop.eup %1382 }
 0xe6a   :  { %v1385_v47 = vpop.eup %1384  ;;  %v537_v48 = vmul.f32 %v1383_v46, %v535_v10  ;;  %vm542_vm0 = vweird.f32 %v1383_v46 }
 0xe6b   :  { %v790_v49 = vadd.f32 1.0, %v1385_v47  ;;  %vm543_vm7 = vmor %vm541_vm4, %vm542_vm0 }
 0xe6c   :  { %v538_v50 = vsub.f32 1.0, %v537_v48 }
 0xe6d   :  { %1386 = vrcp.f32 %v790_v49  ;;  %v802_v3 = vand.u32 2147483648, %v790_v49  ;;  %vm796_vm12 = vweird.f32 %v790_v49  ;;  %v800_v4 = vand.u32 2147483647, %v790_v49 }
 0xe6e   :  { %v539_v51 = vmul.f32 %v1383_v46, %v538_v50 }
 0xe6f   :  { %v803_v6 = vor.u32 1.1754944e-38, %v802_v3  ;;  %vm801_vm14 = vcmp.eq.f32.partialorder %v800_v4, 8.507059e+37 }
 0xe70   :  { %v540_v53 = vadd.f32 %v1383_v46, %v539_v51 }
 0xe72   :  { %v544_v57 = vsel %vm543_vm7, %v1383_v46, %v540_v53 }
 0xe73   :  { %v1387_v52 = vpop.eup %1386  ;;  %v549_v62 = vsel %vm546_vm8, %v548_v58, %v544_v57 }
 0xe74   :  { %v792_v56 = vmul.f32 %v1387_v52, %v790_v49  ;;  %vm797_vm5 = vweird.f32 %v1387_v52  ;;  %v555_v13 = vmul.f32 %v553_v12, %v549_v62 }
 0xe75   :  { %vm798_vm13 = vmor %vm796_vm12, %vm797_vm5 }
 0xe76   :  { %v793_v59 = vsub.f32 1.0, %v792_v56 }
 0xe78   :  { %v794_v1 = vmul.f32 %v1387_v52, %v793_v59 }
 0xe7a   :  { %v795_v2 = vadd.f32 %v1387_v52, %v794_v1 }
 0xe7c   :  { %v799_v5 = vsel %vm798_vm13, %v1387_v52, %v795_v2 }
 0xe7d   :  { %v804_v11 = vsel %vm801_vm14, %v803_v6, %v799_v5 }
 0xe7e   :  { %v810_v19 = vmul.f32 %v808_v17, %v804_v11 }
 0xeac   :  { %v558_v63 = vpop.permute.xlu1 %557 }
 0xead   :  { %v560_v0 = vmul.f32 %v558_v63, %v549_v62 }
 0xeaf   :  { %562 = vrot.lane.b32.xlu0 %v560_v0, %s1475_s19 }
 0xeba   :  { %v813_v9 = vpop.permute.xlu2 %812 }
 0xebb   :  { %v815_v8 = vmul.f32 %v813_v9, %v804_v11 }
 0xebd   :  { %817 = vrot.lane.b32.xlu1 %v815_v8, %s1475_s19 }
 0xf21   :  { %v563_v14 = vpop.permute.xlu0 %562 }
 0xf22   :  { %v1711_v15 = vadd.f32 %v563_v14, %v555_v13 }
 0xf24   :  { %1388 = vtanh.f32 %v1711_v15 }
 0xf2a   :  { %v1389_v16 = vpop.eup %1388 }
 0xf2b   :  { %568 = vrot.lane.b32.xlu2 %v1389_v16, %s1475_s19 }
 0xf2f   :  { %v818_v20 = vpop.permute.xlu1 %817 }
 0xf30   :  { %v820_v22 = vadd.f32 %v818_v20, %v810_v19 }
 0xf32   :  { %1390 = vtanh.f32 %v820_v22  ;;  %v878_v53 = vrot.slane %v820_v22, 6  ;;  %v627_v22 = vrot.slane %v1711_v15, 6 }
 0xf38   :  { %v1391_v24 = vpop.eup %1390 }
 0xf39   :  { %823 = vrot.lane.b32.xlu0 %v1391_v24, %s1475_s19 }
 0xf85   :  { %v569_v25 = vpop.permute.xlu2 %568 }
 0xf86   :  { %v1717_v18 = vmul.f32 %v569_v25, %v549_v62 }
 0xf88   :  { %v577_v61 = vrot.slane %v1717_v18, 4 }
 0xf8a   :  { %578 = vrot.lane.b32.xlu1 %v577_v61, %s1476_s3 }
 0xfab   :  { %v824_v26 = vpop.permute.xlu0 %823 }
 0xfac   :  { %v826_v27 = vmul.f32 %v824_v26, %v804_v11 }
 0xfae   :  { %v828_v30 = vrot.slane %v826_v27, 2 }
 0xfb0   :  { %829 = vrot.lane.b32.xlu2 %v828_v30, %s1476_s3 }
 0xffc   :  { %v579_v23 = vpop.permute.xlu1 %578 }
 0xffd   :  { %1292 = vmatmul.msk.f32.vlgmr.msra.gmra.mxu1 %vm71_vm6, %v579_v23 }
 0xffe   :  { %1051 = vmatpush.msra.mxu1 %v1618_v28 }
0x1000   :  { %1052 = vmatpush.msra.mxu1 %v1624_v29 }
0x1002   :  { %1053 = vmatpush.msra.mxu1 %v1632_v31 }
0x1004   :  { %1054 = vmatpush.msra.mxu1 %v1648_v33 }
0x100a   :  { %v830_v32 = vpop.permute.xlu2 %829 }
0x100b   :  { %1299 = vmatmul.msk.f32.vlgmr.msrb.gmra.mxu1 %vm71_vm6, %v830_v32 }
0x107a   :  { %v599_v34 = vpop.f32.mrf.mxu1 }
0x107b   :  { %v603_v45 = vrot.slane %v599_v34, 2 }
0x107d   :  { %v605_v48 = vadd.f32 %v603_v45, %v1592_v60 }
0x107f   :  { %v1293_v60 = vmul.f32 -1.442695, %v605_v48 }
0x1088   :  { %v850_v35 = vpop.f32.mrf.mxu1 }
0x1089   :  { %v854_v36 = vrot.slane %v850_v35, 4 }
0x108b   :  { %v856_v37 = vadd.f32 %v854_v36, %v1678_v43 }
0x108d   :  { %1392 = vtanh.f32 %v856_v37  ;;  %v1300_v39 = vmul.f32 -1.442695, %v856_v37 }
0x108f   :  { %1394 = vpow2.f32 %v1300_v39 }
0x1093   :  { %v1393_v38 = vpop.eup %1392 }
0x1094   :  { %882 = vrot.lane.b32.xlu0 %v1393_v38, %s1475_s19 }
0x1095   :  { %v1395_v28 = vpop.eup %1394 }
0x1096   :  { %v860_v29 = vadd.f32 1.0, %v1395_v28 }
0x1098   :  { %1396 = vrcp.f32 %v860_v29  ;;  %v872_v44 = vand.u32 2147483648, %v860_v29  ;;  %vm866_vm1 = vweird.f32 %v860_v29  ;;  %v870_v10 = vand.u32 2147483647, %v860_v29 }
0x1099   :  { %1398 = vtanh.f32 %v605_v48 }
0x109a   :  { %v873_v47 = vor.u32 1.1754944e-38, %v872_v44  ;;  %vm871_vm3 = vcmp.eq.f32.partialorder %v870_v10, 8.507059e+37 }
0x109e   :  { %v1397_v31 = vpop.eup %1396 }
0x109f   :  { %v862_v40 = vmul.f32 %v1397_v31, %v860_v29  ;;  %vm867_vm15 = vweird.f32 %v1397_v31  ;;  %v1399_v52 = vpop.eup %1398 }
0x10a0   :  { %vm868_vm2 = vmor %vm866_vm1, %vm867_vm15 }
0x10a1   :  { %v863_v33 = vsub.f32 1.0, %v862_v40 }
0x10a3   :  { %v864_v41 = vmul.f32 %v1397_v31, %v863_v33 }
0x10a5   :  { %v865_v42 = vadd.f32 %v1397_v31, %v864_v41 }
0x10a7   :  { %v869_v46 = vsel %vm868_vm2, %v1397_v31, %v865_v42 }
0x10a8   :  { %v874_v50 = vsel %vm871_vm3, %v873_v47, %v869_v46 }
0x10a9   :  { %v880_v54 = vmul.f32 %v878_v53, %v874_v50 }
0x1106   :  { %v883_v49 = vpop.permute.xlu0 %882 }
0x1107   :  { %v885_v51 = vmul.f32 %v883_v49, %v874_v50 }
0x1109   :  { %887 = vrot.lane.b32.xlu1 %v885_v51, %s1475_s19 }
0x1111   :  { %631 = vrot.lane.b32.xlu1 %v1399_v52, %s1475_s19 }
0x117b   :  { %v888_v55 = vpop.permute.xlu1 %887 }
0x117c   :  { %v1733_v56 = vadd.f32 %v888_v55, %v880_v54 }
0x117e   :  { %1400 = vtanh.f32 %v1733_v56  ;;  %v948_v41 = vrot.slane %v1733_v56, 6 }
0x117f   :  { %1402 = vpow2.f32 %v1293_v60 }
0x1183   :  { %v632_v8 = vpop.permute.xlu1 %631 }
0x1184   :  { %v1401_v57 = vpop.eup %1400 }
0x1185   :  { %893 = vrot.lane.b32.xlu2 %v1401_v57, %s1475_s19  ;;  %v1403_v58 = vpop.eup %1402 }
0x1186   :  { %v609_v59 = vadd.f32 1.0, %v1403_v58 }
0x1188   :  { %1404 = vrcp.f32 %v609_v59  ;;  %v621_v6 = vand.u32 2147483648, %v609_v59  ;;  %vm615_vm4 = vweird.f32 %v609_v59  ;;  %v619_v9 = vand.u32 2147483647, %v609_v59 }
0x118a   :  { %v622_v12 = vor.u32 1.1754944e-38, %v621_v6  ;;  %vm620_vm8 = vcmp.eq.f32.partialorder %v619_v9, 8.507059e+37 }
0x118e   :  { %v1405_v62 = vpop.eup %1404 }
0x118f   :  { %v611_v63 = vmul.f32 %v1405_v62, %v609_v59  ;;  %vm616_vm0 = vweird.f32 %v1405_v62 }
0x1190   :  { %vm617_vm7 = vmor %vm615_vm4, %vm616_vm0 }
0x1191   :  { %v612_v0 = vsub.f32 1.0, %v611_v63 }
0x1193   :  { %v613_v1 = vmul.f32 %v1405_v62, %v612_v0 }
0x1195   :  { %v614_v4 = vadd.f32 %v1405_v62, %v613_v1 }
0x1197   :  { %v618_v11 = vsel %vm617_vm7, %v1405_v62, %v614_v4 }
0x1198   :  { %v623_v13 = vsel %vm620_vm8, %v622_v12, %v618_v11 }
0x1199   :  { %v634_v14 = vmul.f32 %v632_v8, %v623_v13  ;;  %v629_v25 = vmul.f32 %v627_v22, %v623_v13 }
0x11df   :  { %v894_v2 = vpop.permute.xlu2 %893 }
0x11e0   :  { %v896_v3 = vmul.f32 %v894_v2, %v874_v50 }
0x11e2   :  { %v898_v5 = vrot.slane %v896_v3, 4 }
0x11e4   :  { %899 = vrot.lane.b32.xlu0 %v898_v5, %s1476_s3 }
0x11ec   :  { %636 = vrot.lane.b32.xlu0 %v634_v14, %s1475_s19 }
0x1256   :  { %v900_v16 = vpop.permute.xlu0 %899 }
0x1257   :  { %1301 = vmatmul.msk.f32.vlgmr.msrb.gmra.mxu3 %vm71_vm6, %v900_v16 }
0x125e   :  { %v637_v24 = vpop.permute.xlu0 %636 }
0x125f   :  { %v1742_v61 = vadd.f32 %v637_v24, %v629_v25 }
0x12da   :  { %v920_v17 = vpop.f32.mrf.mxu3 }
0x12db   :  { %v924_v19 = vrot.slane %v920_v17, 2 }
0x12dd   :  { %v926_v20 = vadd.f32 %v924_v19, %v1678_v43 }
0x12df   :  { %1406 = vtanh.f32 %v926_v20  ;;  %v1302_v30 = vmul.f32 -1.442695, %v926_v20 }
0x12e0   :  { %1408 = vtanh.f32 %v1742_v61 }
0x12e1   :  { %1410 = vpow2.f32 %v1302_v30 }
0x12e5   :  { %v1407_v26 = vpop.eup %1406 }
0x12e6   :  { %952 = vrot.lane.b32.xlu2 %v1407_v26, %s1475_s19  ;;  %v1409_v27 = vpop.eup %1408 }
0x12e7   :  { %v1411_v43 = vpop.eup %1410 }
0x12e8   :  { %v930_v15 = vadd.f32 1.0, %v1411_v43 }
0x12ea   :  { %1412 = vrcp.f32 %v930_v15  ;;  %v942_v37 = vand.u32 2147483648, %v930_v15  ;;  %vm936_vm12 = vweird.f32 %v930_v15  ;;  %v940_v38 = vand.u32 2147483647, %v930_v15 }
0x12ec   :  { %v943_v28 = vor.u32 1.1754944e-38, %v942_v37  ;;  %vm941_vm14 = vcmp.eq.f32.partialorder %v940_v38, 8.507059e+37 }
0x12ee   :  { %642 = vrot.lane.b32.xlu2 %v1409_v27, %s1475_s19 }
0x12f0   :  { %v1413_v23 = vpop.eup %1412 }
0x12f1   :  { %v932_v32 = vmul.f32 %v1413_v23, %v930_v15  ;;  %vm937_vm5 = vweird.f32 %v1413_v23 }
0x12f2   :  { %vm938_vm13 = vmor %vm936_vm12, %vm937_vm5 }
0x12f3   :  { %v933_v34 = vsub.f32 1.0, %v932_v32 }
0x12f5   :  { %v934_v35 = vmul.f32 %v1413_v23, %v933_v34 }
0x12f6   :  { %573 = vrot.lane.b32.xlu2 %v1717_v18, %s1476_s3 }
0x12f7   :  { %v935_v36 = vadd.f32 %v1413_v23, %v934_v35 }
0x12f9   :  { %v939_v39 = vsel %vm938_vm13, %v1413_v23, %v935_v36 }
0x12fa   :  { %v944_v18 = vsel %vm941_vm14, %v943_v28, %v939_v39 }
0x12fb   :  { %v950_v42 = vmul.f32 %v948_v41, %v944_v18 }
0x1340   :  { %v953_v29 = vpop.permute.xlu2 %952 }
0x1341   :  { %v955_v31 = vmul.f32 %v953_v29, %v944_v18 }
0x1343   :  { %957 = vrot.lane.b32.xlu1 %v955_v31, %s1475_s19 }
0x1348   :  { %v643_v40 = vpop.permute.xlu2 %642 }
0x1349   :  { %v645_v47 = vmul.f32 %v643_v40, %v623_v13 }
0x134b   :  { %499 = vrot.lane.b32.xlu1 %v1693_v21, %s1476_s3 }
0x1350   :  { %v574_v33 = vpop.permute.xlu2 %573 }
0x1351   :  { %576 = vst.msk [vmem:[#allocation2 + $0x8] sm:$0x30] %vm284_vm10, %v574_v33 }
0x13b5   :  { %v958_v44 = vpop.permute.xlu1 %957 }
0x13b6   :  { %v960_v10 = vadd.f32 %v958_v44, %v950_v42 }
0x13b8   :  { %1414 = vtanh.f32 %v960_v10  ;;  %v1015_v8 = vrot.slane %v960_v10, 6 }
0x13bd   :  { %v500_v45 = vpop.permute.xlu1 %499 }
0x13be   :  { %v1415_v46 = vpop.eup %1414  ;;  %502 = vst.msk [vmem:[#allocation2 + $0x8] sm:$0xc] %vm209_vm9, %v500_v45 }
0x13bf   :  { %963 = vrot.lane.b32.xlu0 %v1415_v46, %s1475_s19 }
0x13c7   :  { %647 = vrot.lane.b32.xlu0 %v645_v47, %s1476_s3 }
0x1431   :  { %v964_v48 = vpop.permute.xlu0 %963 }
0x1432   :  { %v966_v21 = vmul.f32 %v964_v48, %v944_v18 }
0x1434   :  { %v968_v49 = vrot.slane %v966_v21, 6 }
0x1436   :  { %969 = vrot.lane.b32.xlu1 %v968_v49, %s1476_s3 }
0x1439   :  { %v648_v50 = vpop.permute.xlu0 %647 }
0x143a   :  { %650 = vst.msk [vmem:[#allocation2 + $0x8] sm:$0xc0] %vm359_vm11, %v648_v50 }
0x143b   :  { %651 = vst.msk [vmem:[%s1812_s7 - $0x6] sm:$0xc0] %vm359_vm11, %v648_v50 }
0x1441   :  { %v667_v51 = vld [vmem:[#allocation2 + $0x8] sm:$0xff] }
0x1442   :  { %1295 = vmatmul.msk.f32.gmra.mxu2 %vm71_vm6, %v667_v51 }
0x14a8   :  { %v970_v52 = vpop.permute.xlu1 %969 }
0x14a9   :  { %1303 = vmatmul.msk.f32.vlgmr.msrb.gmra.mxu0 %vm71_vm6, %v970_v52 }
0x14c5   :  { %v697_v53 = vpop.f32.mrf.mxu2 }
0x14c6   :  { %v1766_v54 = vadd.f32 %v1675_v7, %v697_v53 }
0x1526   :  { %v990_v55 = vpop.f32.mrf.mxu0 }
0x1527   :  { %v993_v56 = vadd.f32 %v990_v55, %v1766_v54 }
0x1529   :  { %1416 = vtanh.f32 %v993_v56  ;;  %v1304_v60 = vmul.f32 -1.442695, %v993_v56 }
0x152b   :  { %1418 = vpow2.f32 %v1304_v60 }
0x152f   :  { %v1417_v57 = vpop.eup %1416 }
0x1530   :  { %1019 = vrot.lane.b32.xlu2 %v1417_v57, %s1475_s19 }
0x1531   :  { %v1419_v58 = vpop.eup %1418 }
0x1532   :  { %v997_v59 = vadd.f32 1.0, %v1419_v58 }
0x1534   :  { %1420 = vrcp.f32 %v997_v59  ;;  %v1009_v7 = vand.u32 2147483648, %v997_v59  ;;  %vm1003_vm10 = vweird.f32 %v997_v59  ;;  %v1007_v3 = vand.u32 2147483647, %v997_v59 }
0x1536   :  { %v1010_v5 = vor.u32 1.1754944e-38, %v1009_v7  ;;  %vm1008_vm1 = vcmp.eq.f32.partialorder %v1007_v3, 8.507059e+37 }
0x153a   :  { %v1421_v62 = vpop.eup %1420 }
0x153b   :  { %v999_v63 = vmul.f32 %v1421_v62, %v997_v59  ;;  %vm1004_vm9 = vweird.f32 %v1421_v62 }
0x153c   :  { %vm1005_vm15 = vmor %vm1003_vm10, %vm1004_vm9 }
0x153d   :  { %v1000_v0 = vsub.f32 1.0, %v999_v63 }
0x153f   :  { %v1001_v1 = vmul.f32 %v1421_v62, %v1000_v0 }
0x1541   :  { %v1002_v2 = vadd.f32 %v1421_v62, %v1001_v1 }
0x1543   :  { %v1006_v4 = vsel %vm1005_vm15, %v1421_v62, %v1002_v2 }
0x1544   :  { %v1011_v9 = vsel %vm1008_vm1, %v1010_v5, %v1006_v4 }
0x1545   :  { %v1017_v12 = vmul.f32 %v1015_v8, %v1011_v9 }
0x158a   :  { %v1020_v6 = vpop.permute.xlu2 %1019 }
0x158b   :  { %v1022_v11 = vmul.f32 %v1020_v6, %v1011_v9 }
0x158d   :  { %1024 = vrot.lane.b32.xlu0 %v1022_v11, %s1475_s19 }
0x15ff   :  { %v1025_v13 = vpop.permute.xlu0 %1024 }
0x1600   :  { %v1027_v14 = vadd.f32 %v1025_v13, %v1017_v12 }
0x1602   :  { %1422 = vtanh.f32 %v1027_v14  ;;  %v1084_v31 = vrot.slane %v1027_v14, 6 }
0x1608   :  { %v1423_v16 = vpop.eup %1422 }
0x1609   :  { %1030 = vrot.lane.b32.xlu1 %v1423_v16, %s1475_s19 }
0x167b   :  { %v1031_v17 = vpop.permute.xlu1 %1030 }
0x167c   :  { %v1033_v19 = vmul.f32 %v1031_v17, %v1011_v9 }
0x167e   :  { %1035 = vrot.lane.b32.xlu2 %v1033_v19, %s1476_s3 }
0x16d8   :  { %v1036_v20 = vpop.permute.xlu2 %1035 }
0x16d9   :  { %1305 = vmatmul.msk.f32.vlgmr.msra.gmra.mxu1 %vm71_vm6, %v1036_v20 }
0x1756   :  { %v1056_v22 = vpop.f32.mrf.mxu1 }
0x1757   :  { %v1060_v24 = vrot.slane %v1056_v22, 6 }
0x1759   :  { %v1062_v25 = vadd.f32 %v1060_v24, %v1766_v54 }
0x175b   :  { %1424 = vtanh.f32 %v1062_v25  ;;  %v1306_v27 = vmul.f32 -1.442695, %v1062_v25 }
0x175d   :  { %1426 = vpow2.f32 %v1306_v27 }
0x1761   :  { %v1425_v26 = vpop.eup %1424 }
0x1762   :  { %1088 = vrot.lane.b32.xlu0 %v1425_v26, %s1475_s19 }
0x1763   :  { %v1427_v30 = vpop.eup %1426 }
0x1764   :  { %v1066_v43 = vadd.f32 1.0, %v1427_v30 }
0x1766   :  { %1428 = vrcp.f32 %v1066_v43  ;;  %v1078_v36 = vand.u32 2147483648, %v1066_v43  ;;  %vm1072_vm3 = vweird.f32 %v1066_v43  ;;  %v1076_v37 = vand.u32 2147483647, %v1066_v43 }
0x1768   :  { %v1079_v39 = vor.u32 1.1754944e-38, %v1078_v36  ;;  %vm1077_vm4 = vcmp.eq.f32.partialorder %v1076_v37, 8.507059e+37 }
0x176c   :  { %v1429_v15 = vpop.eup %1428 }
0x176d   :  { %v1068_v23 = vmul.f32 %v1429_v15, %v1066_v43  ;;  %vm1073_vm2 = vweird.f32 %v1429_v15 }
0x176e   :  { %vm1074_vm0 = vmor %vm1072_vm3, %vm1073_vm2 }
0x176f   :  { %v1069_v32 = vsub.f32 1.0, %v1068_v23 }
0x1771   :  { %v1070_v34 = vmul.f32 %v1429_v15, %v1069_v32 }
0x1773   :  { %v1071_v35 = vadd.f32 %v1429_v15, %v1070_v34 }
0x1775   :  { %v1075_v38 = vsel %vm1074_vm0, %v1429_v15, %v1071_v35 }
0x1776   :  { %v1080_v29 = vsel %vm1077_vm4, %v1079_v39, %v1075_v38 }
0x1777   :  { %v1086_v40 = vmul.f32 %v1084_v31, %v1080_v29 }
0x17d4   :  { %v1089_v28 = vpop.permute.xlu0 %1088 }
0x17d5   :  { %v1091_v18 = vmul.f32 %v1089_v28, %v1080_v29 }
0x17d7   :  { %1093 = vrot.lane.b32.xlu1 %v1091_v18, %s1475_s19 }
0x1849   :  { %v1094_v33 = vpop.permute.xlu1 %1093 }
0x184a   :  { %v1096_v41 = vadd.f32 %v1094_v33, %v1086_v40 }
0x184c   :  { %1430 = vtanh.f32 %v1096_v41  ;;  %v1154_v7 = vrot.slane %v1096_v41, 6 }
0x1852   :  { %v1431_v42 = vpop.eup %1430 }
0x1853   :  { %1099 = vrot.lane.b32.xlu2 %v1431_v42, %s1475_s19 }
0x18ad   :  { %v1100_v44 = vpop.permute.xlu2 %1099 }
0x18ae   :  { %v1102_v10 = vmul.f32 %v1100_v44, %v1080_v29 }
0x18b0   :  { %v1104_v45 = vrot.slane %v1102_v10, 2 }
0x18b2   :  { %1105 = vrot.lane.b32.xlu0 %v1104_v45, %s1476_s3 }
0x1924   :  { %v1106_v46 = vpop.permute.xlu0 %1105 }
0x1925   :  { %1307 = vmatmul.msk.f32.vlgmr.msrb.gmra.mxu2 %vm71_vm6, %v1106_v46 }
0x19a8   :  { %v1126_v47 = vpop.f32.mrf.mxu2 }
0x19a9   :  { %v1130_v48 = vrot.slane %v1126_v47, 4 }
0x19ab   :  { %v1132_v21 = vadd.f32 %v1130_v48, %v1766_v54 }
0x19ad   :  { %1432 = vtanh.f32 %v1132_v21  ;;  %v1308_v50 = vmul.f32 -1.442695, %v1132_v21 }
0x19af   :  { %1434 = vpow2.f32 %v1308_v50 }
0x19b3   :  { %v1433_v49 = vpop.eup %1432 }
0x19b4   :  { %1158 = vrot.lane.b32.xlu1 %v1433_v49, %s1475_s19 }
0x19b5   :  { %v1435_v51 = vpop.eup %1434 }
0x19b6   :  { %v1136_v52 = vadd.f32 1.0, %v1435_v51 }
0x19b8   :  { %1436 = vrcp.f32 %v1136_v52  ;;  %v1148_v58 = vand.u32 2147483648, %v1136_v52  ;;  %vm1142_vm8 = vweird.f32 %v1136_v52  ;;  %v1146_v59 = vand.u32 2147483647, %v1136_v52 }
0x19ba   :  { %v1149_v63 = vor.u32 1.1754944e-38, %v1148_v58  ;;  %vm1147_vm12 = vcmp.eq.f32.partialorder %v1146_v59, 8.507059e+37 }
0x19be   :  { %v1437_v53 = vpop.eup %1436 }
0x19bf   :  { %v1138_v55 = vmul.f32 %v1437_v53, %v1136_v52  ;;  %vm1143_vm7 = vweird.f32 %v1437_v53 }
0x19c0   :  { %vm1144_vm5 = vmor %vm1142_vm8, %vm1143_vm7 }
0x19c1   :  { %v1139_v56 = vsub.f32 1.0, %v1138_v55 }
0x19c3   :  { %v1140_v57 = vmul.f32 %v1437_v53, %v1139_v56 }
0x19c5   :  { %v1141_v60 = vadd.f32 %v1437_v53, %v1140_v57 }
0x19c7   :  { %v1145_v62 = vsel %vm1144_vm5, %v1437_v53, %v1141_v60 }
0x19c8   :  { %v1150_v1 = vsel %vm1147_vm12, %v1149_v63, %v1145_v62 }
0x19c9   :  { %v1156_v3 = vmul.f32 %v1154_v7, %v1150_v1 }
0x1a26   :  { %v1159_v0 = vpop.permute.xlu1 %1158 }
0x1a27   :  { %v1161_v2 = vmul.f32 %v1159_v0, %v1150_v1 }
0x1a29   :  { %1163 = vrot.lane.b32.xlu2 %v1161_v2, %s1475_s19 }
0x1a83   :  { %v1164_v4 = vpop.permute.xlu2 %1163 }
0x1a84   :  { %v1166_v5 = vadd.f32 %v1164_v4, %v1156_v3 }
0x1a86   :  { %1438 = vtanh.f32 %v1166_v5  ;;  %v1224_v36 = vrot.slane %v1166_v5, 6 }
0x1a8c   :  { %v1439_v6 = vpop.eup %1438 }
0x1a8d   :  { %1169 = vrot.lane.b32.xlu0 %v1439_v6, %s1475_s19 }
0x1aff   :  { %v1170_v9 = vpop.permute.xlu0 %1169 }
0x1b00   :  { %v1172_v11 = vmul.f32 %v1170_v9, %v1150_v1 }
0x1b02   :  { %v1174_v8 = vrot.slane %v1172_v11, 4 }
0x1b04   :  { %1175 = vrot.lane.b32.xlu1 %v1174_v8, %s1476_s3 }
0x1b76   :  { %v1176_v12 = vpop.permute.xlu1 %1175 }
0x1b77   :  { %1309 = vmatmul.msk.f32.vlgmr.msra.gmra.mxu3 %vm71_vm6, %v1176_v12 }
0x1bfa   :  { %v1196_v13 = vpop.f32.mrf.mxu3 }
0x1bfb   :  { %v1200_v14 = vrot.slane %v1196_v13, 2 }
0x1bfd   :  { %v1202_v16 = vadd.f32 %v1200_v14, %v1766_v54 }
0x1bff   :  { %1440 = vtanh.f32 %v1202_v16  ;;  %v1310_v19 = vmul.f32 -1.442695, %v1202_v16 }
0x1c01   :  { %1442 = vpow2.f32 %v1310_v19 }
0x1c05   :  { %v1441_v17 = vpop.eup %1440 }
0x1c06   :  { %1228 = vrot.lane.b32.xlu2 %v1441_v17, %s1475_s19 }
0x1c07   :  { %v1443_v20 = vpop.eup %1442 }
0x1c08   :  { %v1206_v22 = vadd.f32 1.0, %v1443_v20 }
0x1c0a   :  { %1444 = vrcp.f32 %v1206_v22  ;;  %v1218_v54 = vand.u32 2147483648, %v1206_v22  ;;  %vm1212_vm13 = vweird.f32 %v1206_v22  ;;  %v1216_v43 = vand.u32 2147483647, %v1206_v22 }
0x1c0c   :  { %v1219_v23 = vor.u32 1.1754944e-38, %v1218_v54  ;;  %vm1217_vm9 = vcmp.eq.f32.partialorder %v1216_v43, 8.507059e+37 }
0x1c0e   :  { %653 = vrot.lane.b32.xlu2 %v1742_v61, %s1477_s16 }
0x1c10   :  { %v1445_v24 = vpop.eup %1444 }
0x1c11   :  { %v1208_v25 = vmul.f32 %v1445_v24, %v1206_v22  ;;  %vm1213_vm6 = vweird.f32 %v1445_v24 }
0x1c12   :  { %vm1214_vm14 = vmor %vm1212_vm13, %vm1213_vm6 }
0x1c13   :  { %v1209_v26 = vsub.f32 1.0, %v1208_v25 }
0x1c15   :  { %v1210_v27 = vmul.f32 %v1445_v24, %v1209_v26 }
0x1c17   :  { %v1211_v30 = vadd.f32 %v1445_v24, %v1210_v27 }
0x1c19   :  { %v1215_v15 = vsel %vm1214_vm14, %v1445_v24, %v1211_v30 }
0x1c1a   :  { %v1220_v61 = vsel %vm1217_vm9, %v1219_v23, %v1215_v15 }
0x1c1b   :  { %v1226_v37 = vmul.f32 %v1224_v36, %v1220_v61 }
0x1c60   :  { %v1229_v32 = vpop.permute.xlu2 %1228 }
0x1c61   :  { %v1231_v34 = vmul.f32 %v1229_v32, %v1220_v61 }
0x1c63   :  { %1233 = vrot.lane.b32.xlu0 %v1231_v34, %s1475_s19 }
0x1c68   :  { %v654_v35 = vpop.permute.xlu2 %653 }
0x1c69   :  { %656 = vst.msk [vmem:[#allocation3 - $0x6] sm:$0xc0] %vm359_vm11, %v654_v35 }
0x1cd5   :  { %v1234_v38 = vpop.permute.xlu0 %1233 }
0x1cd6   :  { %v1236_v39 = vadd.f32 %v1234_v38, %v1226_v37 }
0x1cd8   :  { %1446 = vtanh.f32 %v1236_v39  ;;  %1250 = vrot.lane.b32.xlu0 %v1236_v39, %s1477_s16 }
0x1cde   :  { %v1447_v28 = vpop.eup %1446 }
0x1cdf   :  { %1239 = vrot.lane.b32.xlu1 %v1447_v28, %s1475_s19 }
0x1d4a   :  { %v1251_v29 = vpop.permute.xlu0 %1250 }
0x1d4b   :  { %1254 = vst.msk [vmem:[#allocation3 - $0x4] sm:$0xc0] %vm359_vm11, %v1251_v29 }
0x1d4c   :  { %1269 = dma.vmem_to_hbm [thread:$0]  %s1262_s18, 64, %s1264_s20, [#allocation4], %s1475_s19, %s1475_s19, %s1479_s21  }
0x1d51   :  { %v1240_v18 = vpop.permute.xlu1 %1239 }
0x1d52   :  { %v1242_v31 = vmul.f32 %v1240_v18, %v1220_v61 }
0x1d54   :  { %1244 = vrot.lane.b32.xlu1 %v1242_v31, %s1476_s3 }
0x1dc6   :  { %v1245_v40 = vpop.permute.xlu1 %1244 }
0x1dc7   :  { %1311 = vst.msk [vmem:[%s1812_s7 - $0x4] sm:$0xc0] %vm359_vm11, %v1245_v40 }
0x1dc8   :  { %1472 = dma.done.wait [#allocation4], 64  }
0x1dc9   :  { %1473 = vsyncadd [#allocation4], 4294967232 }
0x1dca   :  { %1276 = vsyncpa [#allocation4], 1 }

</bundles_post_ra>
